<compile_context>
chip_gen: v5e
topology: v5e:2x2
jax: 0.10.0
libtpu: 0.0.40
codegen_flags: <defaults>
</compile_context>

<pallas_src>
import functools

import jax
import jax.numpy as jnp
from jax.experimental import pallas as pl
from jax.experimental.pallas import tpu as pltpu


def _round_up(x, m):
    return ((x + m - 1) // m) * m


# ----------------------------------------------------------------------------
# Fused Pallas kernel
# ----------------------------------------------------------------------------

def _fused_vae_kernel(seed_ref,                        # SMEM scalar prefetch (1,) int32
                      pos_ref,                         # (tm, 3)
                      basis_ref,                       # (3, E//2)
                      wsin_ref, wcos_ref, benc_ref,    # (E//2, Cenc) x2, (1, Cenc)
                      wdec_ref, bdec_ref,              # (L, Cdec), (1, Cdec)
                      dec_ref,                         # (tm, Cdec) bf16
                      kl_ref,                          # (tm, 1) f32
                      *, latent_dim, noise_scale):
    tm = pos_ref.shape[0]

    # PointEmbed.embed: proj = pos @ basis ; emb = [sin(proj), cos(proj)]
    proj = jnp.dot(pos_ref[...], basis_ref[...], preferred_element_type=jnp.float32)

    # Composed encoder affine (PTV3-surrogate + mean_fc + logvar_fc).  sin/cos
    # halves use split weight rows so no in-kernel concatenate is needed;
    # output columns are [mean | logvar] (lane-dense).
    enc = (jnp.dot(jnp.sin(proj), wsin_ref[...], preferred_element_type=jnp.float32)
           + jnp.dot(jnp.cos(proj), wcos_ref[...], preferred_element_type=jnp.float32)
           + benc_ref[...])
    mean = enc[:, :latent_dim]
    logvar = jnp.clip(enc[:, latent_dim:2 * latent_dim], -30.0, 20.0)

    std = jnp.exp(0.5 * logvar)
    var = std * std                                     # single transcendental

    # DiagonalGaussianDistribution.sample(): statically gated noise path.
    if noise_scale != 0.0:
        half = latent_dim // 2
        rows = jax.lax.broadcasted_iota(jnp.int32, (tm, latent_dim), 0)
        cols = jax.lax.broadcasted_iota(jnp.int32, (tm, latent_dim), 1)
        tok = pl.program_id(0) * tm + rows               # global token id
        ctr = (tok * latent_dim + cols).astype(jnp.uint32)
        # Counter-hash ("lowbias32") -> uniform bits.  Pure VPU int ops; works
        # on hardware and in interpret mode (no pltpu.prng_* primitives).
        x = ctr ^ seed_ref[0].astype(jnp.uint32)
        x = (x ^ (x >> 16)) * jnp.uint32(0x7FEB352D)
        x = (x ^ (x >> 15)) * jnp.uint32(0x846CA68B)
        x = x ^ (x >> 16)
        u = (x >> 8).astype(jnp.int32).astype(jnp.float32) * (1.0 / 16777216.0)
        u1 = u[:, :half] + (0.5 / 16777216.0)            # in (0, 1]
        u2 = u[:, half:]
        # Box-Muller using BOTH branches: half the log/sqrt count.
        r = jnp.sqrt(-2.0 * jnp.log(u1))
        th = (2.0 * jnp.pi) * u2
        noise = jnp.concatenate([r * jnp.cos(th), r * jnp.sin(th)], axis=1)
        z = mean + (noise_scale * std) * noise
    else:
        z = mean

    # Per-token KL contribution, kept in f32 in its own tiny output.
    kl_ref[...] = 0.5 * jnp.sum(mean * mean + var - 1.0 - logvar,
                                axis=-1, keepdims=True)

    # Composed decoder affine (proj folded into rotate/mask/sh heads) into one
    # lane-dense slab; written back in bf16 to halve the dominant HBM stream.
    dec = jnp.dot(z, wdec_ref[...], preferred_element_type=jnp.float32) + bdec_ref[...]
    dec_ref[...] = dec.astype(dec_ref.dtype)


# ----------------------------------------------------------------------------
# pallas_call wrapper
# ----------------------------------------------------------------------------

def fused_vae_forward(pos_flat, seed, basis, w_sin, w_cos, b_enc, w_dec, b_dec,
                      *, latent_dim, noise_scale, tm=2048):
    """Returns (dec_slab[M_pad, Cdec] bf16, kl[M_pad, 1] f32); caller slices."""
    M = pos_flat.shape[0]
    # Tile selection: big tiles (default 2048) to amortize the ~0.35us/step
    # pipeline overhead, but never collapse to a 1-step grid when M allows >=2
    # steps (v7x has 2 TensorCores).  Multiples of 16 (bf16 output sublanes).
    tm_eff = min(tm, _round_up(max((M + 1) // 2, 16), 16))
    M_pad = _round_up(M, tm_eff)
    if M_pad != M:
        pos_flat = jnp.pad(pos_flat, ((0, M_pad - M), (0, 0)))
    dec_cols = b_dec.shape[1]

    kernel = functools.partial(_fused_vae_kernel, latent_dim=latent_dim,
                               noise_scale=noise_scale)

    def full(a):  # whole-array (VMEM-resident) block, same tile every grid step
        return pl.BlockSpec(a.shape, lambda i, s: (0,) * a.ndim)

    dec, kl = pl.pallas_call(
        kernel,
        out_shape=(jax.ShapeDtypeStruct((M_pad, dec_cols), jnp.bfloat16),
                   jax.ShapeDtypeStruct((M_pad, 1), jnp.float32)),
        grid_spec=pltpu.PrefetchScalarGridSpec(
            num_scalar_prefetch=1,
            grid=(M_pad // tm_eff,),
            in_specs=[pl.BlockSpec((tm_eff, 3), lambda i, s: (i, 0)),
                      full(basis), full(w_sin), full(w_cos), full(b_enc),
                      full(w_dec), full(b_dec)],
            out_specs=(pl.BlockSpec((tm_eff, dec_cols), lambda i, s: (i, 0)),
                       pl.BlockSpec((tm_eff, 1), lambda i, s: (i, 0))),
        ),
        compiler_params=pltpu.CompilerParams(
            dimension_semantics=("parallel",),
            vmem_limit_bytes=32 * 1024 * 1024),
    )(seed, pos_flat, basis, w_sin, w_cos, b_enc, w_dec, b_dec)
    return dec, kl


# ----------------------------------------------------------------------------
# Parameter initialization + affine composition
# ----------------------------------------------------------------------------

def init_linear(key, din, dout):
    kw, kb = jax.random.split(key)
    bound = 1.0 / (din ** 0.5)
    w = jax.random.uniform(kw, (din, dout), jnp.float32, -bound, bound)
    b = jax.random.uniform(kb, (1, dout), jnp.float32, -bound, bound)
    return w, b


def init_linear_chain(key, dims):
    ks = jax.random.split(key, len(dims) - 1)
    return [init_linear(k, dims[i], dims[i + 1]) for i, k in enumerate(ks)]


def compose_affine(layers):
    # (x @ W1 + b1) @ W2 + b2 ... == x @ W + b   (no activations in the module)
    w, b = layers[0]
    for w2, b2 in layers[1:]:
        b = b @ w2 + b2
        w = w @ w2
    return w, b


def pad_cols(x, cols):
    return jnp.pad(x, ((0, 0), (0, cols - x.shape[1])))


def make_pointembed_basis(hidden_dim):
    # Standard PointEmbed basis: (3, hidden_dim//2), block-diagonal 2^k * pi.
    assert hidden_dim % 6 == 0, "PointEmbed hidden_dim must be divisible by 6"
    k = hidden_dim // 6
    e = (2.0 ** jnp.arange(k, dtype=jnp.float32)) * jnp.pi
    z = jnp.zeros((k,), jnp.float32)
    return jnp.stack([jnp.concatenate([e, z, z]),
                      jnp.concatenate([z, e, z]),
                      jnp.concatenate([z, z, e])], axis=0)


# ----------------------------------------------------------------------------
# Model
# ----------------------------------------------------------------------------

class PTV3ShapeVAEPallas:
    def __init__(self, key, mask_degree=3, sh_degree=2,
                 latent_dim=64, positional_embedding_dim=48):
        assert latent_dim % 2 == 0
        mask_dim = 2 * mask_degree + 1          # 7
        sh_dim = (sh_degree + 1) ** 2           # 9
        ptv3_output_dim = 64
        E = positional_embedding_dim
        L = latent_dim

        self.latent_dim = L
        self.mask_dim = mask_dim
        self.sh_dim = sh_dim
        self.n_dec = 3 + mask_dim + sh_dim
        self.basis = make_pointembed_basis(E)   # (3, E//2)

        keys = jax.random.split(key, 8)
        # TODO(synk): PointTransformerV3 (point serialization + sparse-attention
        # backbone) has no clean self-contained Pallas equivalent; it is replaced
        # by a per-point linear surrogate E -> 64 that is folded into the
        # composed encoder weights below.
        ptv3_surrogate = init_linear(keys[0], E, ptv3_output_dim)
        mean_fc = init_linear_chain(keys[1], (ptv3_output_dim, L // 2, L // 2, L))
        logvar_fc = init_linear_chain(keys[2], (ptv3_output_dim, L // 2, L // 2, L))
        proj = init_linear_chain(keys[3], (L, L // 2, L // 2, ptv3_output_dim))
        rot_dec = init_linear_chain(keys[4], (ptv3_output_dim, ptv3_output_dim // 2,
                                              ptv3_output_dim // 2, 3))
        mask_dec = init_linear_chain(keys[5], (ptv3_output_dim, ptv3_output_dim // 2,
                                               ptv3_output_dim // 2, mask_dim))
        sh_dec = init_linear_chain(keys[6], (ptv3_output_dim, ptv3_output_dim // 2,
                                             ptv3_output_dim // 2, sh_dim))
        self.default_key = keys[7]

        # ---- collapse activation-free Linear chains into single affines ----
        wm, bm = compose_affine([ptv3_surrogate] + mean_fc)      # (E, L)
        wv, bv = compose_affine([ptv3_surrogate] + logvar_fc)    # (E, L)
        w_enc = jnp.concatenate([wm, wv], axis=1)                # (E, 2L)
        b_enc = jnp.concatenate([bm, bv], axis=1)                # (1, 2L)
        enc_cols = _round_up(2 * L, 128)                         # lane-dense
        w_enc = pad_cols(w_enc, enc_cols)
        b_enc = pad_cols(b_enc, enc_cols)
        # Split weight rows into sin/cos halves so the kernel never concatenates.
        self.w_sin = w_enc[:E // 2]
        self.w_cos = w_enc[E // 2:]
        self.b_enc = b_enc

        w_proj, b_proj = compose_affine(proj)                    # (L, 64)
        heads = [compose_affine(rot_dec), compose_affine(mask_dec),
                 compose_affine(sh_dec)]
        w_heads = jnp.concatenate([w for w, _ in heads], axis=1) # (64, 3+7+9)
        b_heads = jnp.concatenate([b for _, b in heads], axis=1)
        w_dec = w_proj @ w_heads                                 # (L, 19)
        b_dec = b_proj @ w_heads + b_heads
        dec_cols = _round_up(self.n_dec, 128)                    # lane-dense slab
        self.w_dec = pad_cols(w_dec, dec_cols)
        self.b_dec = pad_cols(b_dec, dec_cols)

    def forward(self, data, drop_prob=0.0, deterministic=False, key=None, tm=2048):
        positions = data["positions"]                            # (B, N, 3)
        B, N, _ = positions.shape
        if key is None:
            # Advance the internal key so repeated calls draw fresh noise.
            self.default_key, key = jax.random.split(self.default_key)
        k_drop, k_noise = jax.random.split(key)

        if drop_prob > 0.0:
            keep = jax.random.bernoulli(k_drop, 1.0 - drop_prob, positions.shape[:2])
            positions = positions * keep[..., None].astype(positions.dtype)

        pos_flat = positions.reshape(B * N, 3).astype(jnp.float32)
        seed = jax.random.randint(k_noise, (1,), 0, jnp.iinfo(jnp.int32).max,
                                  dtype=jnp.int32)

        dec_slab, kl_tok = fused_vae_forward(
            pos_flat, seed, self.basis, self.w_sin, self.w_cos, self.b_enc,
            self.w_dec, self.b_dec,
            latent_dim=self.latent_dim,
            noise_scale=0.0 if deterministic else 1.0, tm=tm)

        # Single slab slice (valid rows + valid cols at once), then cheap splits
        # on the small (B, N, 19) array.
        M = B * N
        out = dec_slab[:M, :self.n_dec].astype(jnp.float32).reshape(B, N, self.n_dec)
        rotate_vectors = out[..., 0:3]
        mask_params = out[..., 3:3 + self.mask_dim]
        sh_params = out[..., 3 + self.mask_dim:]

        if deterministic:
            kl = jnp.zeros((B,), jnp.float32)
        else:
            kl = kl_tok[:M, 0].reshape(B, N).sum(axis=1)

        return {
            "mash_params_dict": {
                "rotate_vectors": rotate_vectors,
                "mask_params": mask_params,
                "sh_params": sh_params,
            },
            "kl": kl,
        }


# ----------------------------------------------------------------------------
# Demo + lightweight self-check against a pure-JAX reference
# ----------------------------------------------------------------------------

if __name__ == "__main__":
    key = jax.random.PRNGKey(0)
    k_model, k_pos, k_fwd1, k_fwd2 = jax.random.split(key, 4)

    B, N = 2, 16
    positions = jax.random.uniform(k_pos, (B, N, 3), jnp.float32, -1.0, 1.0)
    data = {"positions": positions}

    model = PTV3ShapeVAEPallas(k_model, mask_degree=3, sh_degree=2,
                               latent_dim=64, positional_embedding_dim=48)

    def reference(positions):
        # Pure-JAX reference using the same composed weights (deterministic z=mean).
        pos = positions.reshape(-1, 3)
        proj = pos @ model.basis
        enc = (jnp.sin(proj) @ model.w_sin + jnp.cos(proj) @ model.w_cos
               + model.b_enc)
        L = model.latent_dim
        mean = enc[:, :L]
        logvar = jnp.clip(enc[:, L:2 * L], -30.0, 20.0)
        kl_tok = 0.5 * jnp.sum(mean * mean + jnp.exp(logvar) - 1.0 - logvar, axis=-1)
        kl = kl_tok.reshape(B, N).sum(axis=1)
        dec = (mean @ model.w_dec + model.b_dec)[:, :model.n_dec]
        return dec.reshape(B, N, model.n_dec), kl

    ref_dec, ref_kl = reference(positions)

    # Stochastic path: shapes, finiteness, and KL (noise-independent).
    out = model.forward(data, key=k_fwd1)
    out = jax.block_until_ready(out)
    md = out["mash_params_dict"]
    assert md["rotate_vectors"].shape == (B, N, 3)
    assert md["mask_params"].shape == (B, N, model.mask_dim)
    assert md["sh_params"].shape == (B, N, model.sh_dim)
    assert out["kl"].shape == (B,)
    for v in (md["rotate_vectors"], md["mask_params"], md["sh_params"], out["kl"]):
        assert bool(jnp.all(jnp.isfinite(v)))
    assert bool(jnp.allclose(out["kl"], ref_kl, rtol=1e-1, atol=2e-1))

    # Deterministic path: decoder heads must match the composed-affine reference.
    det = model.forward(data, deterministic=True, key=k_fwd2)
    det = jax.block_until_ready(det)
    got = jnp.concatenate([det["mash_params_dict"]["rotate_vectors"],
                           det["mash_params_dict"]["mask_params"],
                           det["mash_params_dict"]["sh_params"]], axis=-1)
    assert bool(jnp.all(jnp.isfinite(got)))
    assert bool(jnp.allclose(got, ref_dec, rtol=5e-2, atol=5e-2))
    assert bool(jnp.all(det["kl"] == 0.0))

    print("KERNEL_OK")
</pallas_src>

<mosaic_0001>
module attributes {stable_mosaic.version = 11 : i64} {
  func.func @_fused_vae_kernel(%arg0: i32, %arg1: memref<1xi32, #tpu.memory_space<smem>>, %arg2: memref<16x3xf32, #tpu.memory_space<vmem>>, %arg3: memref<3x24xf32, #tpu.memory_space<vmem>>, %arg4: memref<24x128xf32, #tpu.memory_space<vmem>>, %arg5: memref<24x128xf32, #tpu.memory_space<vmem>>, %arg6: memref<1x128xf32, #tpu.memory_space<vmem>>, %arg7: memref<64x128xf32, #tpu.memory_space<vmem>>, %arg8: memref<1x128xf32, #tpu.memory_space<vmem>>, %arg9: memref<16x128xbf16, #tpu.memory_space<vmem>>, %arg10: memref<16x1xf32, #tpu.memory_space<vmem>>) attributes {dimension_semantics = [#tpu.dimension_semantics<parallel>], iteration_bounds = array<i64: 2>, scalar_prefetch = 1 : i64, scratch_operands = 0 : i64, tpu.core_type = #tpu.core_type<tc>, window_params = [{transform_indices = @transform_0, window_bounds = array<i64: 16, 3>}, {pipeline_mode = #tpu.pipeline_mode<synchronous>, transform_indices = @transform_1, window_bounds = array<i64: 3, 24>}, {pipeline_mode = #tpu.pipeline_mode<synchronous>, transform_indices = @transform_2, window_bounds = array<i64: 24, 128>}, {pipeline_mode = #tpu.pipeline_mode<synchronous>, transform_indices = @transform_3, window_bounds = array<i64: 24, 128>}, {pipeline_mode = #tpu.pipeline_mode<synchronous>, transform_indices = @transform_4, window_bounds = array<i64: 1, 128>}, {pipeline_mode = #tpu.pipeline_mode<synchronous>, transform_indices = @transform_5, window_bounds = array<i64: 64, 128>}, {pipeline_mode = #tpu.pipeline_mode<synchronous>, transform_indices = @transform_6, window_bounds = array<i64: 1, 128>}, {transform_indices = @transform_7, window_bounds = array<i64: 16, 128>}, {transform_indices = @transform_8, window_bounds = array<i64: 16, 1>}]} {
    %c0 = arith.constant 0 : index
    %c0_0 = arith.constant 0 : index
    %0 = vector.load %arg2[%c0, %c0_0] : memref<16x3xf32, #tpu.memory_space<vmem>>, vector<16x3xf32>
    %c0_1 = arith.constant 0 : index
    %c0_2 = arith.constant 0 : index
    %1 = vector.load %arg3[%c0_1, %c0_2] : memref<3x24xf32, #tpu.memory_space<vmem>>, vector<3x24xf32>
    %cst = arith.constant dense<0.000000e+00> : vector<16x24xf32>
    %2 = tpu.matmul %0, %1, %cst {dimension_numbers = #tpu.dot_dimension_numbers<[1], [0], [0], [1], [0, 0, 1, 1], [], []>} : vector<16x3xf32>, vector<3x24xf32>, vector<16x24xf32> -> vector<16x24xf32>
    %3 = math.sin %2 : vector<16x24xf32>
    %c0_3 = arith.constant 0 : index
    %c0_4 = arith.constant 0 : index
    %4 = vector.load %arg4[%c0_3, %c0_4] : memref<24x128xf32, #tpu.memory_space<vmem>>, vector<24x128xf32>
    %cst_5 = arith.constant dense<0.000000e+00> : vector<16x128xf32>
    %5 = tpu.matmul %3, %4, %cst_5 {dimension_numbers = #tpu.dot_dimension_numbers<[1], [0], [0], [1], [0, 0, 1, 1], [], []>} : vector<16x24xf32>, vector<24x128xf32>, vector<16x128xf32> -> vector<16x128xf32>
    %6 = math.cos %2 : vector<16x24xf32>
    %c0_6 = arith.constant 0 : index
    %c0_7 = arith.constant 0 : index
    %7 = vector.load %arg5[%c0_6, %c0_7] : memref<24x128xf32, #tpu.memory_space<vmem>>, vector<24x128xf32>
    %cst_8 = arith.constant dense<0.000000e+00> : vector<16x128xf32>
    %8 = tpu.matmul %6, %7, %cst_8 {dimension_numbers = #tpu.dot_dimension_numbers<[1], [0], [0], [1], [0, 0, 1, 1], [], []>} : vector<16x24xf32>, vector<24x128xf32>, vector<16x128xf32> -> vector<16x128xf32>
    %9 = arith.addf %5, %8 : vector<16x128xf32>
    %c0_9 = arith.constant 0 : index
    %c0_10 = arith.constant 0 : index
    %10 = vector.load %arg6[%c0_9, %c0_10] : memref<1x128xf32, #tpu.memory_space<vmem>>, vector<1x128xf32>
    %11 = vector.broadcast %10 : vector<1x128xf32> to vector<16x128xf32>
    %12 = arith.addf %9, %11 : vector<16x128xf32>
    %13 = vector.extract_strided_slice %12 {offsets = [0, 0], sizes = [16, 64], strides = [1, 1]} : vector<16x128xf32> to vector<16x64xf32>
    %14 = vector.extract_strided_slice %12 {offsets = [0, 64], sizes = [16, 64], strides = [1, 1]} : vector<16x128xf32> to vector<16x64xf32>
    %cst_11 = arith.constant -3.000000e+01 : f32
    %cst_12 = arith.constant 2.000000e+01 : f32
    %15 = vector.broadcast %cst_11 : f32 to vector<16x64xf32>
    %16 = arith.maximumf %15, %14 : vector<16x64xf32>
    %17 = vector.broadcast %cst_12 : f32 to vector<16x64xf32>
    %18 = arith.minimumf %17, %16 : vector<16x64xf32>
    %cst_13 = arith.constant 5.000000e-01 : f32
    %19 = vector.broadcast %cst_13 : f32 to vector<16x64xf32>
    %20 = arith.mulf %19, %18 : vector<16x64xf32>
    %21 = math.exp %20 : vector<16x64xf32>
    %22 = arith.mulf %21, %21 : vector<16x64xf32>
    %23 = tpu.iota {dimensions = array<i32: 0>} : vector<16x64xi32>
    %24 = tpu.iota {dimensions = array<i32: 1>} : vector<16x64xi32>
    %c16_i32 = arith.constant 16 : i32
    %25 = arith.muli %arg0, %c16_i32 : i32
    %26 = vector.broadcast %25 : i32 to vector<16x64xi32>
    %27 = arith.addi %26, %23 : vector<16x64xi32>
    %c64_i32 = arith.constant 64 : i32
    %28 = vector.broadcast %c64_i32 : i32 to vector<16x64xi32>
    %29 = arith.muli %27, %28 : vector<16x64xi32>
    %30 = arith.addi %29, %24 : vector<16x64xi32>
    %c0_14 = arith.constant 0 : index
    %31 = memref.load %arg1[%c0_14] : memref<1xi32, #tpu.memory_space<smem>>
    %32 = vector.broadcast %31 : i32 to vector<16x64xi32>
    %33 = arith.xori %30, %32 : vector<16x64xi32>
    %c16_i32_15 = arith.constant 16 : i32
    %34 = vector.broadcast %c16_i32_15 : i32 to vector<16x64xi32>
    %35 = arith.shrui %33, %34 : vector<16x64xi32>
    %36 = arith.xori %33, %35 : vector<16x64xi32>
    %c2146121005_i32 = arith.constant 2146121005 : i32
    %37 = vector.broadcast %c2146121005_i32 : i32 to vector<16x64xi32>
    %38 = arith.muli %36, %37 : vector<16x64xi32>
    %c15_i32 = arith.constant 15 : i32
    %39 = vector.broadcast %c15_i32 : i32 to vector<16x64xi32>
    %40 = arith.shrui %38, %39 : vector<16x64xi32>
    %41 = arith.xori %38, %40 : vector<16x64xi32>
    %c-2073254261_i32 = arith.constant -2073254261 : i32
    %42 = vector.broadcast %c-2073254261_i32 : i32 to vector<16x64xi32>
    %43 = arith.muli %41, %42 : vector<16x64xi32>
    %c16_i32_16 = arith.constant 16 : i32
    %44 = vector.broadcast %c16_i32_16 : i32 to vector<16x64xi32>
    %45 = arith.shrui %43, %44 : vector<16x64xi32>
    %46 = arith.xori %43, %45 : vector<16x64xi32>
    %c8_i32 = arith.constant 8 : i32
    %47 = vector.broadcast %c8_i32 : i32 to vector<16x64xi32>
    %48 = arith.shrui %46, %47 : vector<16x64xi32>
    %49 = arith.sitofp %48 : vector<16x64xi32> to vector<16x64xf32>
    %cst_17 = arith.constant 5.96046448E-8 : f32
    %50 = vector.broadcast %cst_17 : f32 to vector<16x64xf32>
    %51 = arith.mulf %49, %50 : vector<16x64xf32>
    %52 = vector.extract_strided_slice %51 {offsets = [0, 0], sizes = [16, 32], strides = [1, 1]} : vector<16x64xf32> to vector<16x32xf32>
    %cst_18 = arith.constant 2.98023224E-8 : f32
    %53 = vector.broadcast %cst_18 : f32 to vector<16x32xf32>
    %54 = arith.addf %52, %53 : vector<16x32xf32>
    %55 = vector.extract_strided_slice %51 {offsets = [0, 32], sizes = [16, 32], strides = [1, 1]} : vector<16x64xf32> to vector<16x32xf32>
    %56 = math.log %54 : vector<16x32xf32>
    %cst_19 = arith.constant -2.000000e+00 : f32
    %57 = vector.broadcast %cst_19 : f32 to vector<16x32xf32>
    %58 = arith.mulf %57, %56 : vector<16x32xf32>
    %59 = math.sqrt %58 : vector<16x32xf32>
    %cst_20 = arith.constant 6.28318548 : f32
    %60 = vector.broadcast %cst_20 : f32 to vector<16x32xf32>
    %61 = arith.mulf %60, %55 : vector<16x32xf32>
    %62 = math.cos %61 : vector<16x32xf32>
    %63 = arith.mulf %59, %62 : vector<16x32xf32>
    %64 = math.sin %61 : vector<16x32xf32>
    %65 = arith.mulf %59, %64 : vector<16x32xf32>
    %66 = tpu.concatenate %63, %65 in 1 : vector<16x32xf32>, vector<16x32xf32> -> vector<16x64xf32>
    %cst_21 = arith.constant 1.000000e+00 : f32
    %67 = vector.broadcast %cst_21 : f32 to vector<16x64xf32>
    %68 = arith.mulf %67, %21 : vector<16x64xf32>
    %69 = arith.mulf %68, %66 : vector<16x64xf32>
    %70 = arith.addf %13, %69 : vector<16x64xf32>
    %71 = arith.mulf %13, %13 : vector<16x64xf32>
    %72 = arith.addf %71, %22 : vector<16x64xf32>
    %cst_22 = arith.constant 1.000000e+00 : f32
    %73 = vector.broadcast %cst_22 : f32 to vector<16x64xf32>
    %74 = arith.subf %72, %73 : vector<16x64xf32>
    %75 = arith.subf %74, %18 : vector<16x64xf32>
    %cst_23 = arith.constant dense<0.000000e+00> : vector<16xf32>
    %76 = vector.multi_reduction <add>, %75, %cst_23 [1] : vector<16x64xf32> to vector<16xf32>
    %77 = vector.shape_cast %76 : vector<16xf32> to vector<16x1xf32>
    %cst_24 = arith.constant 5.000000e-01 : f32
    %78 = vector.broadcast %cst_24 : f32 to vector<16x1xf32>
    %79 = arith.mulf %78, %77 : vector<16x1xf32>
    %c0_25 = arith.constant 0 : index
    %c0_26 = arith.constant 0 : index
    %80 = vector.load %arg10[%c0_25, %c0_26] : memref<16x1xf32, #tpu.memory_space<vmem>>, vector<16x1xf32>
    tpu.vector_store %arg10[%c0_25, %c0_26], %79 {strides = array<i32>} : memref<16x1xf32, #tpu.memory_space<vmem>>, vector<16x1xf32>,
    %c0_27 = arith.constant 0 : index
    %c0_28 = arith.constant 0 : index
    %81 = vector.load %arg7[%c0_27, %c0_28] : memref<64x128xf32, #tpu.memory_space<vmem>>, vector<64x128xf32>
    %cst_29 = arith.constant dense<0.000000e+00> : vector<16x128xf32>
    %82 = tpu.matmul %70, %81, %cst_29 {dimension_numbers = #tpu.dot_dimension_numbers<[1], [0], [0], [1], [0, 0, 1, 1], [], []>} : vector<16x64xf32>, vector<64x128xf32>, vector<16x128xf32> -> vector<16x128xf32>
    %c0_30 = arith.constant 0 : index
    %c0_31 = arith.constant 0 : index
    %83 = vector.load %arg8[%c0_30, %c0_31] : memref<1x128xf32, #tpu.memory_space<vmem>>, vector<1x128xf32>
    %84 = vector.broadcast %83 : vector<1x128xf32> to vector<16x128xf32>
    %85 = arith.addf %82, %84 : vector<16x128xf32>
    %86 = arith.truncf %85 : vector<16x128xf32> to vector<16x128xbf16>
    %c0_32 = arith.constant 0 : index
    %c0_33 = arith.constant 0 : index
    %87 = vector.load %arg9[%c0_32, %c0_33] : memref<16x128xbf16, #tpu.memory_space<vmem>>, vector<16x128xbf16>
    tpu.vector_store %arg9[%c0_32, %c0_33], %86 {strides = array<i32>} : memref<16x128xbf16, #tpu.memory_space<vmem>>, vector<16x128xbf16>,
    return
  }
  func.func @transform_0(%arg0: i32, %arg1: memref<1xi32, #tpu.memory_space<smem>>) -> (i32, i32) {
    %c0_i32 = arith.constant 0 : i32
    %c0_i32_0 = arith.constant 0 : i32
    return %arg0, %c0_i32 : i32, i32
  }
  func.func @transform_1(%arg0: i32, %arg1: memref<1xi32, #tpu.memory_space<smem>>) -> (i32, i32) {
    %c0_i32 = arith.constant 0 : i32
    %c0_i32_0 = arith.constant 0 : i32
    %c0_i32_1 = arith.constant 0 : i32
    return %c0_i32, %c0_i32_0 : i32, i32
  }
  func.func @transform_2(%arg0: i32, %arg1: memref<1xi32, #tpu.memory_space<smem>>) -> (i32, i32) {
    %c0_i32 = arith.constant 0 : i32
    %c0_i32_0 = arith.constant 0 : i32
    %c0_i32_1 = arith.constant 0 : i32
    return %c0_i32, %c0_i32_0 : i32, i32
  }
  func.func @transform_3(%arg0: i32, %arg1: memref<1xi32, #tpu.memory_space<smem>>) -> (i32, i32) {
    %c0_i32 = arith.constant 0 : i32
    %c0_i32_0 = arith.constant 0 : i32
    %c0_i32_1 = arith.constant 0 : i32
    return %c0_i32, %c0_i32_0 : i32, i32
  }
  func.func @transform_4(%arg0: i32, %arg1: memref<1xi32, #tpu.memory_space<smem>>) -> (i32, i32) {
    %c0_i32 = arith.constant 0 : i32
    %c0_i32_0 = arith.constant 0 : i32
    %c0_i32_1 = arith.constant 0 : i32
    return %c0_i32, %c0_i32_0 : i32, i32
  }
  func.func @transform_5(%arg0: i32, %arg1: memref<1xi32, #tpu.memory_space<smem>>) -> (i32, i32) {
    %c0_i32 = arith.constant 0 : i32
    %c0_i32_0 = arith.constant 0 : i32
    %c0_i32_1 = arith.constant 0 : i32
    return %c0_i32, %c0_i32_0 : i32, i32
  }
  func.func @transform_6(%arg0: i32, %arg1: memref<1xi32, #tpu.memory_space<smem>>) -> (i32, i32) {
    %c0_i32 = arith.constant 0 : i32
    %c0_i32_0 = arith.constant 0 : i32
    %c0_i32_1 = arith.constant 0 : i32
    return %c0_i32, %c0_i32_0 : i32, i32
  }
  func.func @transform_7(%arg0: i32, %arg1: memref<1xi32, #tpu.memory_space<smem>>) -> (i32, i32) {
    %c0_i32 = arith.constant 0 : i32
    %c0_i32_0 = arith.constant 0 : i32
    return %arg0, %c0_i32 : i32, i32
  }
  func.func @transform_8(%arg0: i32, %arg1: memref<1xi32, #tpu.memory_space<smem>>) -> (i32, i32) {
    %c0_i32 = arith.constant 0 : i32
    %c0_i32_0 = arith.constant 0 : i32
    return %arg0, %c0_i32 : i32, i32
  }
}

</mosaic_0001>

<bundles_post_ra>
// kernel: tpu_custom_call.1
= control target key start
LH: loop header
LB: loop body
LE: loop exit
PB: predicated region body
PF: predicated region fallthrough
CT: control target
= control target key end

     0   :  { %s3050_s0 = inlined_call_operand.<no memory space> [shape: s32[1], index: 0, kind: input, shape index: {}]   ;;  %s3051_s1 = inlined_call_operand.vmem [shape: f32[32,3], index: 1, kind: input, shape index: {}]   ;;  %s3052_s2 = inlined_call_operand.vmem [shape: f32[3,24], index: 2, kind: input, shape index: {}]   ;;  %s3053_s3 = inlined_call_operand.vmem [shape: f32[24,128], index: 3, kind: input, shape index: {}]   ;;  %s3054_s4 = inlined_call_operand.hbm [shape: f32[24,128], index: 4, kind: input, shape index: {}]   ;;  %s3055_s5 = inlined_call_operand.vmem [shape: f32[1,128], index: 5, kind: input, shape index: {}]   ;;  %s3056_s6 = inlined_call_operand.hbm [shape: f32[64,128], index: 6, kind: input, shape index: {}]   ;;  %s3057_s7 = inlined_call_operand.vmem [shape: f32[1,128], index: 7, kind: input, shape index: {}]   ;;  %s3058_s8 = inlined_call_operand.hbm [shape: bf16[32,128], index: 8, kind: output, shape index: {0}]   ;;  %s3059_s9 = inlined_call_operand.vmem [shape: f32[32,1], index: 9, kind: output, shape index: {1}]  }
   0x1   :  { %3061 = sst [smem:[#allocation13_spill]] %s3051_s1 }
   0x2   :  { %3062 = sst [smem:[#allocation14_spill]] %s3052_s2 }
   0x3   :  { %15 = sst [smem:[#allocation3]] %s3050_s0 }
   0x4   :  { %16 = vsyncpa [#allocation5], 0 }
   0x5   :  { %17 = vsyncpa [#allocation8], 0 }
   0x6   :  { %18 = vsyncpa [#allocation6], 0 }
   0x7   :  { %20 = vsyncpa [#allocation6 + $0x1], 0  ;;  %s2407_s11 = smov 0   ;;  %s2409_s12 = smov 0  }
   0x8   :  { %s2411_s13 = smov 0   ;;  %s2413_s14 = smov 0  }
   0x9 LB: > { %s2428_s0 = sadd.s32 4294967295, %s2337_s14   ;;  %s2052_s15 = sadd.s32 4294967294, %s2337_s14   ;;  %s2337_s14 = sphi %s2413_s14, %s3078_s14   ;;  %s2333_s13 = sphi %s2411_s13, %s3077_s13   ;;  %s2329_s12 = sphi %s2409_s12, %s3076_s12   ;;  %s2325_s11 = sphi %s2407_s11, %s3075_s11  }
   0xa   : > { %s2432_s16 = sadd.s32 1, %s2337_s14   ;;  %s185_s17 = sadd.s32 1, %s2333_s13 }
   0xb   : > { %s182_s18 = ssub.s32 %s2337_s14, %s2432_s16  ;;  %p195_p0 = scmp.ne.s32.totalorder %s2333_s13, %s2329_s12 }
   0xc   : > { %p183_p1 = scmp.eq.s32.totalorder %s182_s18, 0  ;;  %p196_p2 = scmp.eq.s32.totalorder %s2428_s0, 1 }
   0xd   : > { %p201_p3 = scmp.ne.s32.totalorder %s2329_s12, %s2325_s11  ;;  %p202_p4 = scmp.eq.s32.totalorder %s2052_s15, 1 }
   0xe   : > { %s2443_s19 = scalar_select %p183_p1, %s2333_s13, %s185_s17  }
   0xf   : > { %p2445_p5 = por %p196_p2, %p195_p0  ;;  %p2449_p6 = por %p202_p4, %p201_p3 }
  0x10   : > { %p2053_p7 = scmp.ge.s32.totalorder %s2337_s14, 1  ;;  %p235_p8 = scmp.lt.s32.totalorder %s2337_s14, 3 }
  0x11   : > { %p2141_p9 = scmp.eq.s32.totalorder %s2428_s0, 0  ;;  %s252_s25 = sshll.u32 %s3054_s4, 4  ;;  %s253_s25 = int_to_ptr.hbm [resolvable:$true] %s252_s25 }
  0x12   : > { %p2456_p10 = pnand %p2053_p7, %p235_p8  ;;  %s2339_s26 = smov [#allocation4]  }
  0x13   : > { %s254_s27 = sshll.u32 %s2339_s26, 4  ;;  %s269_s30 = sshll.u32 %s3056_s6, 4  ;;  %s255_s27 = int_to_ptr.vmem [resolvable:$true] %s254_s27  ;;  %s270_s30 = int_to_ptr.hbm [resolvable:$true] %s269_s30 }
  0x14   : > { %p2130_p11 = pneg %p2456_p10  ;;  %s2340_s10 = smov 128  }
  0x15   : > { %s2341_s15 = smov 8   ;;  %s2342_s17 = smov [#allocation7]  }
  0x16   : > { %p2131_p12 = pnand %p2141_p9, %p2130_p11  ;;  %s271_s18 = sshll.u32 %s2342_s17, 4  ;;  %s272_s18 = int_to_ptr.vmem [resolvable:$true] %s271_s18 }
  0x17   : > { %299 = sbr.rel (%p2456_p10) target bundleno = 771 (0x303), region = 48 }
  0x18   : > { %2133 = dma.hbm_to_vmem [thread:$0]  (!%p2131_p12), %s253_s25, 384, %s255_s27, [#allocation5], %s2340_s10, %s2340_s10, %s2341_s15  }
  0x19   : > { %2136 = dma.hbm_to_vmem [thread:$0]  (!%p2131_p12), %s270_s30, 1024, %s272_s18, [#allocation8], %s2340_s10, %s2340_s10, %s2341_s15  }
  0x1c   : > { %2312 = dma.done.wait (%p2141_p9), [#allocation5], 384  }
  0x1d   : > { %2314 = vsyncadd (%p2141_p9), [#allocation5], 4294966912 }
  0x1e   : > { %2316 = dma.done.wait (%p2141_p9), [#allocation8], 1024  }
  0x1f   : > { %2318 = vsyncadd (%p2141_p9), [#allocation8], 4294966272  ;;  %s2061_s23 = sshll.u32 %s2428_s0, 1  ;;  %v1095_v0 = vlaneseq  ;;  %s2084_s24 = sshll.u32 %s2428_s0, 4  ;;  %vm367_vm0 = vcmask 1042432   ;;  %vm360_vm1 = vcmask 23552  }
  0x20   : > { %p345_p13 = scmp.lt.s32.totalorder %s2061_s23, 3  ;;  %v1101_v2 = vstv %s2084_s24  ;;  %s1108_s22 = sld [smem:[#allocation3]] }
  0x21   : > { %v1096_v1 = vshrl.u32 %v1095_v0, 7  ;;  %s3066_s1 = sld [smem:[#allocation13_spill]]  ;;  %v1099_v7 = vand.u32 127, %v1095_v0  ;;  %s2350_s10 = smov 96  }
  0x22   : > { %s3080_s23 = smov (!%p345_p13, %s2061_s23), 3  ;;  %s3067_s2 = sld [smem:[#allocation14_spill]] }
  0x23   : > { %s2062_s25 = sshll.u32 %s3080_s23, 3  ;;  %v1097_v3 = vadd.s32 8, %v1096_v1  ;;  %v1102_v4 = vadd.s32 %v1101_v2, %v1096_v1  ;;  %s2351_s27 = smov 32  }
  0x24   : > { %s3060_s30 = smov 64   ;;  %s2106_s17 = sshll.u32 %s2428_s0, 3 }
  0x25   : > { %v1103_v8 = vadd.s32 %v1101_v2, %v1097_v3  ;;  %v1104_v9 = vmul.u32 64, %v1102_v4  ;;  %v2343_v2 = vmov 683565275   ;;  %v2344_v4 = vmov 2475754826   ;;  %s2287_s24 = scalar_lea.hbm %s3058_s8, 16 }
  0x26   : > { %v1109_v12 = vstv %s1108_s22 }
  0x27   : > { %s348_s28 = scalar_lea.vmem %s3066_s1, %s2062_s25  ;;  %v1105_v10 = vmul.u32 64, %v1103_v8  ;;  %v1106_v11 = vadd.s32 %v1104_v9, %v1099_v7  ;;  %v2346_v8 = vmov 2102212464  }
  0x28   : > { %v359_v5 = vld [vmem:[%s3067_s2] sm:$0x7]  ;;  %v358_v17 = vld [vmem:[%s348_s28 + $0x8] sm:$0xff] }
  0x29   : > { %v357_v6 = vld [vmem:[%s348_s28] sm:$0xff]  ;;  %2065 = vmatpush.msk.msra.mxu0 %vm367_vm0, %v359_v5  ;;  %v1107_v13 = vadd.s32 %v1105_v10, %v1099_v7  ;;  %v1110_v14 = vxor.u32 %v1109_v12, %v1106_v11  ;;  %v2347_v10 = vmov 920167782  }
  0x2a   : > { %2066 = vmatmul.msk.f32.vlgmr.msra.gmra.mxu0 %vm360_vm1, %v357_v6  ;;  %v2345_v6 = vmov 2131351028  }
  0x2b   : > { %v1111_v15 = vxor.u32 %v1109_v12, %v1107_v13  ;;  %v1112_v16 = vshrl.u32 %v1110_v14, 16 }
  0x2d   : > { %v1113_v18 = vshrl.u32 %v1111_v15, 16  ;;  %v1114_v19 = vxor.u32 %v1112_v16, %v1110_v14 }
  0x2f   : > { %v1115_v20 = vxor.u32 %v1113_v18, %v1111_v15  ;;  %v1116_v21 = vmul.u32 2146121005, %v1114_v19  ;;  %v2348_v19 = vmov 1326507024  }
  0x31   : > { %v1117_v22 = vmul.u32 2146121005, %v1115_v20  ;;  %v1118_v23 = vshrl.u32 %v1116_v21, 15 }
  0x32   : > { %2067 = vmatmul.msk.f32.gmra.mxu0 %vm360_vm1, %v358_v17 }
  0x33   : > { %v1119_v24 = vshrl.u32 %v1117_v22, 15  ;;  %v1120_v25 = vxor.u32 %v1118_v23, %v1116_v21 }
  0x35   : > { %v1121_v26 = vxor.u32 %v1119_v24, %v1117_v22  ;;  %v1122_v27 = vmul.u32 2221713035, %v1120_v25 }
  0x37   : > { %v1123_v28 = vmul.u32 2221713035, %v1121_v26  ;;  %v1124_v29 = vshrl.u32 %v1122_v27, 16 }
  0x39   : > { %v1125_v30 = vshrl.u32 %v1123_v28, 16  ;;  %v1126_v31 = vxor.u32 %v1124_v29, %v1122_v27 }
  0x3b   : > { %v1127_v32 = vxor.u32 %v1125_v30, %v1123_v28  ;;  %v1128_v33 = vshrl.u32 %v1126_v31, 8 }
  0x3d   : > { %v1129_v34 = vshrl.u32 %v1127_v32, 8  ;;  %v1130_v35 = vcvt.s32.f32 %v1128_v33 }
  0x3f   : > { %v1131_v36 = vcvt.s32.f32 %v1129_v34  ;;  %v2495_v37 = vmul.f32 5.9604645e-08, %v1130_v35 }
  0x41   : > { %v2497_v38 = vmul.f32 5.9604645e-08, %v1131_v36  ;;  %v2500_v39 = vmul.f32 6.2831855, %v2495_v37 }
  0x43   : > { %v2503_v40 = vmul.f32 6.2831855, %v2497_v38  ;;  %v1168_v41 = vand.u32 2147483647, %v2500_v39  ;;  %v1171_v42 = vand.u32 2139095040, %v2500_v39 }
  0x45   : > { %v1322_v43 = vand.u32 2147483647, %v2503_v40  ;;  %v1325_v44 = vand.u32 2139095040, %v2503_v40  ;;  %v1172_v45 = vshrl.u32 %v1171_v42, 23  ;;  %v1175_v46 = vand.u32 8388607, %v1168_v41 }
  0x47   : > { %v1326_v47 = vshrl.u32 %v1325_v44, 23  ;;  %v1329_v48 = vand.u32 8388607, %v1322_v43  ;;  %v2085_v49 = vadd.s32 4294967169, %v1172_v45  ;;  %v1176_v50 = vor.u32 8388608, %v1175_v46 }
  0x49   : > { %v2088_v51 = vadd.s32 4294967169, %v1326_v47  ;;  %v1330_v52 = vor.u32 8388608, %v1329_v48  ;;  %v1178_v53 = vadd.s32 1, %v2085_v49  ;;  %v2515_v57 = vshll.u32 %v1176_v50, 8 }
  0x4b   : > { %v1332_v54 = vadd.s32 1, %v2088_v51  ;;  %vm1179_vm2 = vcmp.gt.s32.totalorder %v1178_v53, 0  ;;  %v2513_v55 = vshll.u32 %v1330_v52, 8  ;;  %v2525_v63 = vand.u32 65535, %v2515_v57 }
  0x4c   : > { %v1180_v56 = vsel %vm1179_vm2, %v1178_v53, 0  ;;  %v2528_v0 = vshrl.u32 %v2515_v57, 16 }
  0x4d   : > { %vm1333_vm3 = vcmp.gt.s32.totalorder %v1332_v54, 0  ;;  %v2517_v59 = vand.u32 31, %v1180_v56  ;;  %v2522_v62 = vand.u32 65535, %v2513_v55  ;;  %v2535_v12 = vshrl.u32 %v1180_v56, 5 }
  0x4e   : > { %v1334_v58 = vsel %vm1333_vm3, %v1332_v54, 0  ;;  %v1372_v44 = vshrl.u32 %v2513_v55, 16 }
  0x4f   : > { %v1336_v60 = vand.u32 31, %v1334_v58  ;;  %v2519_v61 = vshrl.u32 %v1334_v58, 5  ;;  %v2538_v13 = vsub.s32 32, %v2517_v59  ;;  %v1185_v17 = vshll.u32 %v2343_v2, %v2517_v59 }
  0x50   : > { %v1188_v21 = vshll.u32 %v2344_v4, %v2517_v59  ;;  %v1191_v30 = vshll.u32 %v2345_v6, %v2517_v59  ;;  %vm1200_vm8 = vcmp.lt.s32.totalorder %v2535_v12, 1  ;;  %vm1201_vm9 = vcmp.lt.s32.totalorder %v2535_v12, 2 }
  0x51   : > { %v1337_v1 = vsub.s32 32, %v1336_v60  ;;  %v1339_v3 = vshll.u32 %v2343_v2, %v1336_v60  ;;  %v1342_v5 = vshll.u32 %v2344_v4, %v1336_v60  ;;  %v1345_v7 = vshll.u32 %v2345_v6, %v1336_v60 }
  0x52   : > { %v1348_v9 = vshll.u32 %v2346_v8, %v1336_v60  ;;  %v1351_v11 = vshll.u32 %v2347_v10, %v1336_v60  ;;  %vm1354_vm4 = vcmp.lt.s32.totalorder %v2519_v61, 1  ;;  %vm1357_vm5 = vcmp.lt.s32.totalorder %v2519_v61, 4 }
  0x53   : > { %v1340_v14 = vshrl.u32 %v2344_v4, %v1337_v1  ;;  %v1343_v15 = vshrl.u32 %v2345_v6, %v1337_v1  ;;  %v1346_v16 = vshrl.u32 %v2346_v8, %v1337_v1  ;;  %v1349_v18 = vshrl.u32 %v2347_v10, %v1337_v1 }
  0x54   : > { %v1352_v20 = vshrl.u32 %v2348_v19, %v1337_v1  ;;  %v1338_v25 = vshrl.u32 %v2343_v2, %v1337_v1  ;;  %vm1356_vm6 = vcmp.lt.s32.totalorder %v2519_v61, 3  ;;  %vm1355_vm7 = vcmp.lt.s32.totalorder %v2519_v61, 2 }
  0x55   : > { %v1341_v22 = vor.u32 %v1340_v14, %v1339_v3  ;;  %v1344_v23 = vor.u32 %v1343_v15, %v1342_v5  ;;  %v1347_v24 = vor.u32 %v1346_v16, %v1345_v7  ;;  %v1350_v26 = vor.u32 %v1349_v18, %v1348_v9 }
  0x56   : > { %v1353_v27 = vor.u32 %v1352_v20, %v1351_v11  ;;  %v1186_v33 = vshrl.u32 %v2344_v4, %v2538_v13  ;;  %v1189_v34 = vshrl.u32 %v2345_v6, %v2538_v13  ;;  %v1192_v48 = vshrl.u32 %v2346_v8, %v2538_v13 }
  0x57   : > { %v1362_v28 = vsel %vm1354_vm4, %v1341_v22, %v1344_v23  ;;  %v1366_v29 = vsel %vm1354_vm4, %v1344_v23, %v1347_v24  ;;  %v1363_v31 = vsel %vm1357_vm5, %v1350_v26, 920167782  ;;  %v1359_v35 = vsel %vm1357_vm5, %v1347_v24, 2102212464 }
  0x58   : > { %v1367_v32 = vsel %vm1357_vm5, %v1353_v27, 1326507024  ;;  %v1364_v36 = vsel %vm1356_vm6, %v1347_v24, %v1363_v31  ;;  %v1358_v45 = vsel %vm1354_vm4, %v1338_v25, %v1341_v22  ;;  %v1360_v53 = vsel %vm1356_vm6, %v1344_v23, %v1359_v35 }
  0x59   : > { %v1368_v42 = vsel %vm1356_vm6, %v1350_v26, %v1367_v32  ;;  %v1365_v46 = vsel %vm1355_vm7, %v1362_v28, %v1364_v36  ;;  %v2580_v54 = vor.u32 %v1186_v33, %v1185_v17  ;;  %v2582_v56 = vor.u32 %v1189_v34, %v1188_v21 }
  0x5a   : > { %v1369_v47 = vsel %vm1355_vm7, %v1366_v29, %v1368_v42  ;;  %v1395_v51 = vand.u32 65535, %v1365_v46  ;;  %v1396_v52 = vshrl.u32 %v1365_v46, 16  ;;  %v2584_v58 = vor.u32 %v1192_v48, %v1191_v30 }
  0x5b   : > { %v1373_v49 = vand.u32 65535, %v1369_v47  ;;  %v1374_v50 = vshrl.u32 %v1369_v47, 16  ;;  %v1194_v5 = vshll.u32 %v2346_v8, %v2517_v59  ;;  %v1195_v14 = vshrl.u32 %v2347_v10, %v2538_v13 }
  0x5c   : > { %v1397_v7 = vmul.u32 %v1395_v51, %v2522_v62  ;;  %v1398_v9 = vmul.u32 %v1396_v52, %v2522_v62  ;;  %v1399_v11 = vmul.u32 %v1395_v51, %v1372_v44  ;;  %v1197_v18 = vshll.u32 %v2347_v10, %v2517_v59 }
  0x5d   : > { %v1375_v60 = vmul.u32 %v1373_v49, %v2522_v62  ;;  %v1376_v1 = vmul.u32 %v1374_v50, %v2522_v62  ;;  %v1377_v3 = vmul.u32 %v1373_v49, %v1372_v44  ;;  %v1378_v15 = vmul.u32 %v1374_v50, %v1372_v44 }
  0x5e   : > { %v1400_v21 = vmul.u32 %v1396_v52, %v1372_v44  ;;  %v1401_v22 = vshll.u32 %v1398_v9, 16  ;;  %v1403_v23 = vshll.u32 %v1399_v11, 16  ;;  %v1402_v25 = vshrl.u32 %v1398_v9, 16 }
  0x5f   : > { %v1379_v16 = vshll.u32 %v1376_v1, 16  ;;  %v1381_v17 = vshll.u32 %v1377_v3, 16  ;;  %v1380_v20 = vshrl.u32 %v1376_v1, 16  ;;  %v1198_v62 = vshrl.u32 %v2348_v19, %v2538_v13 }
  0x60   : > { %v2349_v26 = vmov 0   ;;  %vm1405_vm11 = vc.u32 %v1397_v7, %v1401_v22  ;;  %v1407_v28 = vadd.s32 %v1401_v22, %v1397_v7  ;;  %v1196_v29 = vor.u32 %v1195_v14, %v1194_v5 }
  0x61   : > { %vm1383_vm10 = vc.u32 %v1375_v60, %v1379_v16  ;;  %v1385_v24 = vadd.s32 %v1379_v16, %v1375_v60  ;;  %v1406_v59 = vsel %vm1405_vm11, 1, %v2349_v26  ;;  %vm1202_vm13 = vcmp.lt.s32.totalorder %v2535_v12, 3 }
  0x62   : > { %v1384_v27 = vsel %vm1383_vm10, 1, %v2349_v26  ;;  %v1408_v32 = vadd.s32 %v1406_v59, %v1400_v21  ;;  %vm1409_vm14 = vc.u32 %v1407_v28, %v1403_v23  ;;  %v1199_v33 = vor.u32 %v1198_v62, %v1197_v18 }
  0x63   : > { %v1386_v30 = vadd.s32 %v1384_v27, %v1378_v15  ;;  %vm1387_vm12 = vc.u32 %v1385_v24, %v1381_v17  ;;  %v1382_v34 = vshrl.u32 %v1377_v3, 16  ;;  %v1410_v36 = vsel %vm1409_vm14, 1, %v2349_v26 }
  0x64   : > { %v1388_v31 = vsel %vm1387_vm12, 1, %v2349_v26  ;;  %vm1203_vm15 = vcmp.lt.s32.totalorder %v2535_v12, 4  ;;  %v1404_v42 = vshrl.u32 %v1399_v11, 16  ;;  %v1412_v44 = vadd.s32 %v1410_v36, %v1408_v32 }
  0x65   : > { %v1390_v35 = vadd.s32 %v1388_v31, %v1386_v30  ;;  %v1208_v46 = vsel %vm1200_vm8, %v2580_v54, %v2582_v56  ;;  %v1209_v47 = vsel %vm1203_vm15, %v1196_v29, 920167782  ;;  %v2611_v49 = vadd.s32 %v1407_v28, %v1403_v23 }
  0x66   : > { %v1210_v50 = vsel %vm1202_vm13, %v2584_v58, %v1209_v47  ;;  %v1212_v51 = vsel %vm1200_vm8, %v2582_v56, %v2584_v58  ;;  %v1361_v52 = vsel %vm1355_vm7, %v1358_v45, %v1360_v53  ;;  %v1413_v60 = vadd.s32 %v1412_v44, %v1402_v25 }
  0x67   : > { %v1391_v48 = vadd.s32 %v1390_v35, %v1380_v20  ;;  %v1211_v1 = vsel %vm1201_vm9, %v1208_v46, %v1210_v50  ;;  %v1213_v3 = vsel %vm1203_vm15, %v1199_v33, 1326507024  ;;  %v1415_v61 = vmul.u32 %v2513_v55, %v1361_v52 }
  0x68   : > { %v1214_v7 = vsel %vm1202_vm13, %v1196_v29, %v1213_v3  ;;  %v1241_v9 = vand.u32 65535, %v1211_v1  ;;  %v1242_v11 = vshrl.u32 %v1211_v1, 16  ;;  %v1414_v14 = vadd.s32 %v1413_v60, %v1404_v42 }
  0x69   : > { %v2626_v5 = vadd.s32 %v1391_v48, %v1382_v34  ;;  %v1215_v15 = vsel %vm1201_vm9, %v1212_v51, %v1214_v7  ;;  %v1184_v55 = vshrl.u32 %v2343_v2, %v2538_v13  ;;  %v1205_v59 = vsel %vm1203_vm15, %v2584_v58, 2102212464 }
  0x6a   : > { %v1219_v45 = vand.u32 65535, %v1215_v15  ;;  %v1220_v53 = vshrl.u32 %v1215_v15, 16  ;;  %v1418_v16 = vadd.s32 1, %v1414_v14  ;;  %v1243_v17 = vmul.u32 %v1241_v9, %v2525_v63 }
  0x6b   : > { %vm1417_vm0 = vc.u32 %v2626_v5, %v2611_v49  ;;  %v1244_v18 = vmul.u32 %v1242_v11, %v2525_v63  ;;  %v1245_v20 = vmul.u32 %v1241_v9, %v2528_v0  ;;  %v1246_v25 = vmul.u32 %v1242_v11, %v2528_v0 }
  0x6c   : > { %v1221_v21 = vmul.u32 %v1219_v45, %v2525_v63  ;;  %v1222_v22 = vmul.u32 %v1220_v53, %v2525_v63  ;;  %v1223_v23 = vmul.u32 %v1219_v45, %v2528_v0  ;;  %v1419_v24 = vsel %vm1417_vm0, %v1418_v16, %v1414_v14 }
  0x6d   : > { %v1247_v62 = vshll.u32 %v1244_v18, 16  ;;  %v1420_v27 = vadd.s32 %v1419_v24, %v1415_v61  ;;  %v1224_v28 = vmul.u32 %v1220_v53, %v2528_v0  ;;  %v1249_v31 = vshll.u32 %v1245_v20, 16 }
  0x6e   : > { %v1225_v29 = vshll.u32 %v1222_v22, 16  ;;  %v1227_v30 = vshll.u32 %v1223_v23, 16  ;;  %v1204_v13 = vsel %vm1200_vm8, %v1184_v55, %v2580_v54  ;;  %v1226_v42 = vshrl.u32 %v1222_v22, 16 }
  0x6f   : > { %vm1251_vm1 = vc.u32 %v1243_v17, %v1247_v62  ;;  %v1421_v63 = vadd.s32 536870912, %v1420_v27  ;;  %v1253_v0 = vadd.s32 %v1247_v62, %v1243_v17  ;;  %v1206_v58 = vsel %vm1202_vm13, %v2582_v56, %v1205_v59 }
  0x70   : > { %vm1229_vm2 = vc.u32 %v1221_v21, %v1225_v29  ;;  %v1231_v32 = vadd.s32 %v1225_v29, %v1221_v21  ;;  %v1252_v33 = vsel %vm1251_vm1, 1, %v2349_v26  ;;  %v1248_v47 = vshrl.u32 %v1244_v18, 16 }
  0x71   : > { %v1230_v34 = vsel %vm1229_vm2, 1, %v2349_v26  ;;  %v1254_v35 = vadd.s32 %v1252_v33, %v1246_v25  ;;  %v1422_v36 = vshrl.u32 %v1421_v63, 30  ;;  %vm1255_vm4 = vc.u32 %v1253_v0, %v1249_v31 }
  0x72   : > { %v1232_v44 = vadd.s32 %v1230_v34, %v1224_v28  ;;  %vm1233_vm3 = vc.u32 %v1231_v32, %v1227_v30  ;;  %v1228_v50 = vshrl.u32 %v1223_v23, 16  ;;  %v1256_v54 = vsel %vm1255_vm4, 1, %v2349_v26 }
  0x73   : > { %v1234_v46 = vsel %vm1233_vm3, 1, %v2349_v26  ;;  %v1423_v48 = vshll.u32 %v1422_v36, 30  ;;  %v1250_v52 = vshrl.u32 %v1245_v20, 16  ;;  %v1258_v60 = vadd.s32 %v1256_v54, %v1254_v35 }
  0x74   : > { %v1236_v51 = vadd.s32 %v1234_v46, %v1232_v44  ;;  %v1257_v7 = vadd.s32 %v1253_v0, %v1249_v31  ;;  %v1207_v9 = vsel %vm1201_vm9, %v1204_v13, %v1206_v58  ;;  %v1416_v21 = vadd.s32 %v2611_v49, %v2626_v5 }
  0x75   : > { %v1424_v1 = vsub.s32 %v1420_v27, %v1423_v48  ;;  %v1259_v11 = vadd.s32 %v1258_v60, %v1248_v47  ;;  %v1261_v45 = vmul.u32 %v2515_v57, %v1207_v9  ;;  %vm1324_vm9 = vcmp.lt.s32.totalorder %v2503_v40, 0 }
  0x76   : > { %v1237_v3 = vadd.s32 %v1236_v51, %v1226_v42  ;;  %v1446_v13 = vsub.s32 4, %v1422_v36  ;;  %vm1323_vm10 = vcmp.le.f32.partialorder %v1322_v43, 0.7853982  ;;  %vm1170_vm12 = vcmp.lt.s32.totalorder %v2500_v39, 0 }
  0x77   : > { %vm1425_vm5 = vcmp.lt.s32.totalorder %v1424_v1, 0  ;;  %v1426_v56 = vsub.s32 0, %v1424_v1  ;;  %v1260_v15 = vadd.s32 %v1259_v11, %v1250_v52  ;;  %vm2679_vm14 = vcmp.le.f32.partialorder %v1168_v41, 0.7853982 }
  0x78   : > { %v1238_v14 = vadd.s32 %v1237_v3, %v1228_v50  ;;  %v1447_v44 = vsel %vm1324_vm9, %v1446_v13, %v1422_v36  ;;  %vm1465_vm1 = vweird.f32 %v2503_v40 }
  0x79   : > { %v1427_v61 = vsel %vm1425_vm5, %v1426_v56, %v1424_v1  ;;  %v1264_v16 = vadd.s32 1, %v1260_v15  ;;  %v2670_v54 = vsel %vm1323_vm10, 0, %v1447_v44 }
  0x7a   : > { %vm1263_vm6 = vc.u32 %v1238_v14, %v1257_v7  ;;  %v1428_v53 = vclz %v1427_v61  ;;  %v1262_v42 = vadd.s32 %v1257_v7, %v1238_v14  ;;  %v1785_v7 = vadd.s32 3, %v2670_v54 }
  0x7b   : > { %v1265_v18 = vsel %vm1263_vm6, %v1264_v16, %v1260_v15 }
  0x7c   : > { %v2089_v17 = vadd.s32 4294967294, %v1428_v53  ;;  %v1266_v20 = vadd.s32 %v1265_v18, %v1261_v45  ;;  %v1786_v16 = vand.u32 3, %v1785_v7 }
  0x7e   : > { %vm2090_vm7 = vcmp.lt.s32.totalorder %v2089_v17, 0  ;;  %v1267_v22 = vadd.s32 536870912, %v1266_v20  ;;  %vm1791_vm13 = vcmp.eq.s32.totalorder %v1786_v16, 2  ;;  %vm1787_vm15 = vcmp.lt.s32.totalorder %v1786_v16, 2 }
  0x7f   : > { %v1431_v12 = vsel %vm2090_vm7, 0, %v2089_v17  ;;  %vm1788_vm0 = vcmp.eq.s32.totalorder %v1786_v16, 0 }
  0x80   : > { %v1432_v23 = vsub.s32 32, %v1431_v12  ;;  %v1433_v24 = vshll.u32 %v1424_v1, %v1431_v12  ;;  %v1436_v55 = vsub.s32 4294967266, %v1431_v12  ;;  %v2663_v25 = vshrl.u32 %v1267_v22, 30 }
  0x82   : > { %v1434_v62 = vshrl.u32 %v1416_v21, %v1432_v23  ;;  %v1437_v27 = vadd.s32 127, %v1436_v55  ;;  %v1269_v57 = vshll.u32 %v2663_v25, 30  ;;  %v1292_v23 = vsub.s32 4, %v2663_v25 }
  0x84   : > { %v1435_v28 = vor.u32 %v1434_v62, %v1433_v24  ;;  %v1438_v29 = vshll.u32 %v1437_v27, 23  ;;  %v1270_v30 = vsub.s32 %v1266_v20, %v1269_v57 }
  0x86   : > { %v1439_v59 = vor.u32 4788187, %v1438_v29  ;;  %v1442_v31 = vcvt.s32.f32 %v1435_v28  ;;  %vm1271_vm8 = vcmp.lt.s32.totalorder %v1270_v30, 0  ;;  %v1272_v63 = vsub.s32 0, %v1270_v30 }
  0x88   : > { %v1440_v49 = vand.u32 2147483647, %v1439_v59  ;;  %v1273_v5 = vsel %vm1271_vm8, %v1272_v63, %v1270_v30 }
  0x89   : > { %v1274_v33 = vclz %v1273_v5 }
  0x8a   : > { %v1443_v32 = vmul.f32 %v1442_v31, %v1440_v49 }
  0x8b   : > { %v2086_v0 = vadd.s32 4294967294, %v1274_v33 }
  0x8c   : > { %v1444_v34 = vxor.u32 2147483648, %v1443_v32 }
  0x8d   : > { %vm2087_vm11 = vcmp.lt.s32.totalorder %v2086_v0, 0 }
  0x8e   : > { %v1445_v35 = vsel %vm1324_vm9, %v1444_v34, %v1443_v32  ;;  %v1277_v46 = vsel %vm2087_vm11, 0, %v2086_v0 }
  0x8f   : > { %v1448_v58 = vsel %vm1323_vm10, %v2503_v40, %v1445_v35  ;;  %v1278_v48 = vsub.s32 32, %v1277_v46  ;;  %v1279_v50 = vshll.u32 %v1270_v30, %v1277_v46  ;;  %v1282_v51 = vsub.s32 4294967266, %v1277_v46 }
  0x90   : > { %v1450_v47 = vmul.f32 %v1448_v58, %v1448_v58  ;;  %v1293_v30 = vsel %vm1170_vm12, %v1292_v23, %v2663_v25  ;;  %vm1311_vm10 = vweird.f32 %v2500_v39 }
  0x91   : > { %v1280_v1 = vshrl.u32 %v1262_v42, %v1278_v48  ;;  %v1283_v3 = vadd.s32 127, %v1282_v51  ;;  %v2704_v25 = vsel %vm2679_vm14, 0, %v1293_v30 }
  0x92   : > { %v1451_v52 = vmul.f32 -0.001358992, %v1450_v47  ;;  %v1458_v60 = vmul.f32 -0.00019511016, %v1450_v47 }
  0x93   : > { %v1281_v11 = vor.u32 %v1280_v1, %v1279_v50  ;;  %v1284_v56 = vshll.u32 %v1283_v3, 23 }
  0x94   : > { %v1452_v43 = vadd.f32 0.041655596, %v1451_v52  ;;  %v1459_v9 = vadd.f32 0.008332121, %v1458_v60 }
  0x95   : > { %v1285_v15 = vor.u32 4788187, %v1284_v56  ;;  %v1288_v61 = vcvt.s32.f32 %v1281_v11 }
  0x96   : > { %v1453_v36 = vmul.f32 %v1452_v43, %v1450_v47  ;;  %v1460_v14 = vmul.f32 %v1459_v9, %v1450_v47 }
  0x97   : > { %v1286_v17 = vand.u32 2147483647, %v1285_v15 }
  0x98   : > { %v1454_v45 = vadd.f32 -0.4999988, %v1453_v36  ;;  %v1461_v53 = vadd.f32 -0.16666654, %v1460_v14 }
  0x99   : > { %v1289_v21 = vmul.f32 %v1288_v61, %v1286_v17 }
  0x9a   : > { %v1455_v18 = vmul.f32 %v1454_v45, %v1450_v47  ;;  %v1462_v20 = vmul.f32 %v1461_v53, %v1450_v47 }
  0x9b   : > { %v1290_v55 = vxor.u32 2147483648, %v1289_v21 }
  0x9c   : > { %v2673_v12 = vadd.f32 1.0, %v1455_v18  ;;  %v1463_v22 = vadd.f32 1.0, %v1462_v20 }
  0x9d   : > { %v1291_v57 = vsel %vm1170_vm12, %v1290_v55, %v1289_v21 }
  0x9e   : > { %v2683_v62 = vmul.f32 %v1463_v22, %v1448_v58  ;;  %v1472_v27 = vxor.u32 2147483648, %v2673_v12  ;;  %v1294_v41 = vsel %vm2679_vm14, %v2500_v39, %v1291_v57  ;;  %v1630_v58 = vadd.s32 3, %v2704_v25 }
  0x9f   : > { %v1296_v59 = vmul.f32 %v1294_v41, %v1294_v41 }
  0xa0   : > { %v1469_v28 = vxor.u32 2147483648, %v2683_v62  ;;  %v1793_v29 = vsel %vm1791_vm13, %v1472_v27, %v2683_v62  ;;  %v2712_v1 = vand.u32 3, %v1630_v58 }
  0xa1   : > { %v1297_v13 = vmul.f32 -0.001358992, %v1296_v59  ;;  %v1304_v34 = vmul.f32 -0.00019511016, %v1296_v59 }
  0xa2   : > { %v1790_v31 = vsel %vm1788_vm0, %v2673_v12, %v1469_v28  ;;  %vm1633_vm3 = vcmp.eq.s32.totalorder %v2712_v1, 0  ;;  %vm1636_vm4 = vcmp.eq.s32.totalorder %v2712_v1, 2  ;;  %vm1632_vm5 = vcmp.lt.s32.totalorder %v2712_v1, 2 }
  0xa3   : > { %v1794_v49 = vsel %vm1787_vm15, %v1790_v31, %v1793_v29  ;;  %v1298_v42 = vadd.f32 0.041655596, %v1297_v13  ;;  %v1305_v44 = vadd.f32 0.008332121, %v1304_v34 }
  0xa4   : > { %v1795_v33 = vsel %vm1465_vm1, nan, %v1794_v49 }
  0xa5   : > { %1800 = vrot.lane.b32.xlu0 %v1795_v33, %s2350_s10  ;;  %v1299_v48 = vmul.f32 %v1298_v42, %v1296_v59  ;;  %v1306_v50 = vmul.f32 %v1305_v44, %v1296_v59 }
  0xa7   : > { %v2698_v63 = vpop.f32.mrf.mxu0  ;;  %v1300_v52 = vadd.f32 -0.4999988, %v1299_v48  ;;  %v1307_v60 = vadd.f32 -0.16666654, %v1306_v50 }
  0xa8   : > { %v394_v5 = vand.u32 2147483647, %v2698_v63  ;;  %v397_v32 = vand.u32 2139095040, %v2698_v63 }
  0xa9   : > { %v1301_v11 = vmul.f32 %v1300_v52, %v1296_v59  ;;  %v1308_v7 = vmul.f32 %v1307_v60, %v1296_v59 }
  0xaa   : > { %v398_v0 = vshrl.u32 %v397_v32, 23  ;;  %v401_v35 = vand.u32 8388607, %v394_v5 }
  0xab   : > { %v1309_v15 = vadd.f32 1.0, %v1308_v7  ;;  %v2729_v21 = vadd.f32 1.0, %v1301_v11 }
  0xac   : > { %v2068_v46 = vadd.s32 4294967169, %v398_v0  ;;  %v402_v47 = vor.u32 8388608, %v401_v35 }
  0xad   : > { %v2739_v49 = vmul.f32 %v1309_v15, %v1294_v41  ;;  %v1318_v13 = vxor.u32 2147483648, %v2729_v21 }
  0xae   : > { %v404_v51 = vadd.s32 1, %v2068_v46  ;;  %v2716_v9 = vshll.u32 %v402_v47, 8 }
  0xaf   : > { %v2714_v3 = vpop.f32.mrf.mxu0  ;;  %v1315_v58 = vxor.u32 2147483648, %v2739_v49 }
  0xb0   : > { %vm405_vm2 = vcmp.gt.s32.totalorder %v404_v51, 0  ;;  %v552_v36 = vand.u32 2139095040, %v2714_v3  ;;  %v443_v20 = vand.u32 65535, %v2716_v9  ;;  %v444_v35 = vshrl.u32 %v2716_v9, 16 }
  0xb1   : > { %v406_v43 = vsel %vm405_vm2, %v404_v51, 0  ;;  %v1635_v60 = vsel %vm1633_vm3, %v2729_v21, %v1315_v58 }
  0xb2   : > { %v408_v56 = vand.u32 31, %v406_v43  ;;  %v2719_v14 = vshrl.u32 %v406_v43, 5  ;;  %v553_v55 = vshrl.u32 %v552_v36, 23  ;;  %v1638_v43 = vsel %vm1636_vm4, %v1318_v13, %v2739_v49 }
  0xb4   : > { %v409_v61 = vsub.s32 32, %v408_v56  ;;  %v411_v45 = vshll.u32 %v2343_v2, %v408_v56  ;;  %v414_v53 = vshll.u32 %v2344_v4, %v408_v56  ;;  %v417_v16 = vshll.u32 %v2345_v6, %v408_v56 }
  0xb5   : > { %v420_v17 = vshll.u32 %v2346_v8, %v408_v56  ;;  %v423_v18 = vshll.u32 %v2347_v10, %v408_v56  ;;  %vm426_vm6 = vcmp.lt.s32.totalorder %v2719_v14, 1  ;;  %vm429_vm7 = vcmp.lt.s32.totalorder %v2719_v14, 4 }
  0xb6   : > { %v412_v22 = vshrl.u32 %v2344_v4, %v409_v61  ;;  %v415_v23 = vshrl.u32 %v2345_v6, %v409_v61  ;;  %v418_v24 = vshrl.u32 %v2346_v8, %v409_v61  ;;  %v421_v57 = vshrl.u32 %v2347_v10, %v409_v61 }
  0xb7   : > { %v424_v29 = vshrl.u32 %v2348_v19, %v409_v61  ;;  %vm428_vm8 = vcmp.lt.s32.totalorder %v2719_v14, 3  ;;  %vm427_vm9 = vcmp.lt.s32.totalorder %v2719_v14, 2  ;;  %v410_v42 = vshrl.u32 %v2343_v2, %v409_v61 }
  0xb8   : > { %v413_v30 = vor.u32 %v412_v22, %v411_v45  ;;  %v416_v59 = vor.u32 %v415_v23, %v414_v53  ;;  %v419_v31 = vor.u32 %v418_v24, %v417_v16  ;;  %v422_v32 = vor.u32 %v421_v57, %v420_v17 }
  0xb9   : > { %v425_v33 = vor.u32 %v424_v29, %v423_v18  ;;  %v2071_v50 = vadd.s32 4294967169, %v553_v55  ;;  %v549_v45 = vand.u32 2147483647, %v2714_v3  ;;  %v1639_v18 = vsel %vm1632_vm5, %v1635_v60, %v1638_v43 }
  0xba   : > { %v434_v34 = vsel %vm426_vm6, %v413_v30, %v416_v59  ;;  %v438_v0 = vsel %vm426_vm6, %v416_v59, %v419_v31  ;;  %v435_v41 = vsel %vm429_vm7, %v422_v32, 920167782  ;;  %v431_v46 = vsel %vm429_vm7, %v419_v31, 2102212464 }
  0xbb   : > { %v439_v44 = vsel %vm429_vm7, %v425_v33, 1326507024  ;;  %v436_v47 = vsel %vm428_vm8, %v419_v31, %v435_v41  ;;  %v430_v15 = vsel %vm426_vm6, %v410_v42, %v413_v30  ;;  %v432_v61 = vsel %vm428_vm8, %v416_v59, %v431_v46 }
  0xbc   : > { %v440_v48 = vsel %vm428_vm8, %v422_v32, %v439_v44  ;;  %v437_v51 = vsel %vm427_vm9, %v434_v34, %v436_v47  ;;  %v559_v55 = vadd.s32 1, %v2071_v50  ;;  %v2785_v57 = vsel %vm427_vm9, %v430_v15, %v432_v61 }
  0xbd   : > { %v441_v52 = vsel %vm427_vm9, %v438_v0, %v440_v48  ;;  %v467_v56 = vand.u32 65535, %v437_v51  ;;  %v468_v36 = vshrl.u32 %v437_v51, 16  ;;  %v556_v34 = vand.u32 8388607, %v549_v45 }
  0xbe   : > { %v445_v11 = vand.u32 65535, %v441_v52  ;;  %v446_v7 = vshrl.u32 %v441_v52, 16  ;;  %vm560_vm13 = vcmp.gt.s32.totalorder %v559_v55, 0 }
  0xbf   : > { %v469_v22 = vmul.u32 %v467_v56, %v443_v20  ;;  %v470_v23 = vmul.u32 %v468_v36, %v443_v20  ;;  %v471_v24 = vmul.u32 %v467_v56, %v444_v35  ;;  %v472_v31 = vmul.u32 %v468_v36, %v444_v35 }
  0xc0   : > { %v447_v53 = vmul.u32 %v445_v11, %v443_v20  ;;  %v448_v16 = vmul.u32 %v446_v7, %v443_v20  ;;  %v449_v17 = vmul.u32 %v445_v11, %v444_v35  ;;  %v450_v29 = vmul.u32 %v446_v7, %v444_v35 }
  0xc1   : > { %v473_v32 = vshll.u32 %v470_v23, 16  ;;  %v475_v33 = vshll.u32 %v471_v24, 16  ;;  %v1640_v20 = vsel %vm1311_vm10, nan, %v1639_v18  ;;  %v561_v44 = vsel %vm560_vm13, %v559_v55, 0 }
  0xc2   : > { %v451_v30 = vshll.u32 %v448_v16, 16  ;;  %v453_v59 = vshll.u32 %v449_v17, 16  ;;  %v452_v0 = vshrl.u32 %v448_v16, 16  ;;  %1798 = vrot.lane.b32.xlu0 %v1640_v20, %s2350_s10  ;;  %v474_v47 = vshrl.u32 %v470_v23, 16 }
  0xc3   : > { %vm477_vm12 = vc.u32 %v469_v22, %v473_v32  ;;  %v479_v14 = vadd.s32 %v473_v32, %v469_v22  ;;  %v454_v50 = vshrl.u32 %v449_v17, 16  ;;  %v563_v60 = vand.u32 31, %v561_v44 }
  0xc4   : > { %vm455_vm11 = vc.u32 %v447_v53, %v451_v30  ;;  %v457_v1 = vadd.s32 %v451_v30, %v447_v53  ;;  %v478_v35 = vsel %vm477_vm12, 1, %v2349_v26  ;;  %v476_v43 = vshrl.u32 %v471_v24, 16 }
  0xc5   : > { %v456_v42 = vsel %vm455_vm11, 1, %v2349_v26  ;;  %v480_v48 = vadd.s32 %v478_v35, %v472_v31  ;;  %vm481_vm15 = vc.u32 %v479_v14, %v475_v33  ;;  %v2796_v11 = vadd.s32 %v479_v14, %v475_v33 }
  0xc6   : > { %v458_v41 = vadd.s32 %v456_v42, %v450_v29  ;;  %vm459_vm14 = vc.u32 %v457_v1, %v453_v59  ;;  %v482_v52 = vsel %vm481_vm15, 1, %v2349_v26  ;;  %v557_v56 = vor.u32 8388608, %v556_v34 }
  0xc7   : > { %v460_v46 = vsel %vm459_vm14, 1, %v2349_v26  ;;  %v484_v7 = vadd.s32 %v482_v52, %v480_v48  ;;  %v2798_v15 = vsub.s32 32, %v563_v60  ;;  %v566_v61 = vshll.u32 %v2343_v2, %v563_v60 }
  0xc8   : > { %v462_v51 = vadd.s32 %v460_v46, %v458_v41  ;;  %v569_v53 = vshll.u32 %v2344_v4, %v563_v60  ;;  %v572_v18 = vshll.u32 %v2345_v6, %v563_v60  ;;  %v575_v17 = vshll.u32 %v2346_v8, %v563_v60 }
  0xc9   : > { %v485_v16 = vadd.s32 %v484_v7, %v474_v47  ;;  %v578_v22 = vshll.u32 %v2347_v10, %v563_v60  ;;  %v2807_v24 = vshrl.u32 %v561_v44, 5  ;;  %v567_v55 = vshrl.u32 %v2344_v4, %v2798_v15 }
  0xca   : > { %v463_v36 = vadd.s32 %v462_v51, %v452_v0  ;;  %v570_v29 = vshrl.u32 %v2345_v6, %v2798_v15  ;;  %v573_v59 = vshrl.u32 %v2346_v8, %v2798_v15  ;;  %v576_v31 = vshrl.u32 %v2347_v10, %v2798_v15 }
  0xcb   : > { %v486_v30 = vadd.s32 %v485_v16, %v476_v43  ;;  %v579_v32 = vshrl.u32 %v2348_v19, %v2798_v15  ;;  %v487_v33 = vmul.u32 %v2716_v9, %v2785_v57  ;;  %v2823_v4 = vor.u32 %v567_v55, %v566_v61 }
  0xcc   : > { %v2805_v23 = vadd.s32 %v463_v36, %v454_v50  ;;  %v2825_v34 = vor.u32 %v570_v29, %v569_v53  ;;  %v574_v0 = vor.u32 %v573_v59, %v572_v18  ;;  %v577_v1 = vor.u32 %v576_v31, %v575_v17 }
  0xcd   : > { %v490_v6 = vadd.s32 1, %v486_v30  ;;  %v580_v8 = vor.u32 %v579_v32, %v578_v22  ;;  %vm581_vm2 = vcmp.lt.s32.totalorder %v2807_v24, 1  ;;  %vm583_vm3 = vcmp.lt.s32.totalorder %v2807_v24, 3 }
  0xce   : > { %vm489_vm0 = vc.u32 %v2805_v23, %v2796_v11  ;;  %vm584_vm4 = vcmp.lt.s32.totalorder %v2807_v24, 4  ;;  %v2830_v10 = vshll.u32 %v557_v56, 8  ;;  %vm582_vm5 = vcmp.lt.s32.totalorder %v2807_v24, 2 }
  0xcf   : > { %v491_v19 = vsel %vm489_vm0, %v490_v6, %v486_v30  ;;  %v589_v9 = vsel %vm581_vm2, %v2823_v4, %v2825_v34  ;;  %v590_v20 = vsel %vm584_vm4, %v577_v1, 920167782  ;;  %v593_v42 = vsel %vm581_vm2, %v2825_v34, %v574_v0 }
  0xd0   : > { %v492_v57 = vadd.s32 %v491_v19, %v487_v33  ;;  %v591_v14 = vsel %vm583_vm3, %v574_v0, %v590_v20  ;;  %v594_v41 = vsel %vm584_vm4, %v580_v8, 1326507024  ;;  %v598_v47 = vand.u32 65535, %v2830_v10 }
  0xd1   : > { %v592_v44 = vsel %vm582_vm5, %v589_v9, %v591_v14  ;;  %v595_v46 = vsel %vm583_vm3, %v577_v1, %v594_v41  ;;  %v599_v50 = vshrl.u32 %v2830_v10, 16  ;;  %v586_v14 = vsel %vm584_vm4, %v574_v0, 2102212464 }
  0xd2   : > { %v493_v35 = vadd.s32 536870912, %v492_v57  ;;  %v596_v48 = vsel %vm582_vm5, %v593_v42, %v595_v46  ;;  %v622_v43 = vand.u32 65535, %v592_v44  ;;  %v623_v7 = vshrl.u32 %v592_v44, 16 }
  0xd3   : > { %v600_v52 = vand.u32 65535, %v596_v48  ;;  %v601_v60 = vshrl.u32 %v596_v48, 16  ;;  %vm396_vm14 = vcmp.lt.s32.totalorder %v2698_v63, 0  ;;  %vm2889_vm15 = vcmp.le.f32.partialorder %v394_v5, 0.7853982  ;;  %v704_v5 = vld [vmem:[%s3053_s3] sm:$0xff] }
  0xd4   : > { %v2854_v51 = vshrl.u32 %v493_v35, 30  ;;  %v625_v16 = vmul.u32 %v623_v7, %v598_v47  ;;  %v624_v29 = vmul.u32 %v622_v43, %v598_v47  ;;  %v626_v30 = vmul.u32 %v622_v43, %v599_v50 }
  0xd5   : > { %v602_v36 = vmul.u32 %v600_v52, %v598_v47  ;;  %v603_v61 = vmul.u32 %v601_v60, %v598_v47  ;;  %v604_v53 = vmul.u32 %v600_v52, %v599_v50  ;;  %v605_v17 = vmul.u32 %v601_v60, %v599_v50 }
  0xd6   : > { %v495_v56 = vshll.u32 %v2854_v51, 30  ;;  %v627_v6 = vmul.u32 %v623_v7, %v599_v50  ;;  %v628_v1 = vshll.u32 %v625_v16, 16  ;;  %v630_v9 = vshll.u32 %v626_v30, 16 }
  0xd7   : > { %v606_v22 = vshll.u32 %v603_v61, 16  ;;  %v608_v55 = vshll.u32 %v604_v53, 16  ;;  %v607_v32 = vshrl.u32 %v603_v61, 16  ;;  %v609_v47 = vshrl.u32 %v604_v53, 16 }
  0xd8   : > { %v496_v18 = vsub.s32 %v492_v57, %v495_v56  ;;  %v565_v57 = vshrl.u32 %v2343_v2, %v2798_v15  ;;  %vm632_vm9 = vc.u32 %v624_v29, %v628_v1  ;;  %v634_v44 = vadd.s32 %v628_v1, %v624_v29 }
  0xd9   : > { %vm610_vm7 = vc.u32 %v602_v36, %v606_v22  ;;  %v612_v31 = vadd.s32 %v606_v22, %v602_v36  ;;  %v633_v35 = vsel %vm632_vm9, 1, %v2349_v26  ;;  %v488_v50 = vadd.s32 %v2796_v11, %v2805_v23 }
  0xda   : > { %vm497_vm6 = vcmp.lt.s32.totalorder %v496_v18, 0  ;;  %v498_v59 = vsub.s32 0, %v496_v18  ;;  %v611_v33 = vsel %vm610_vm7, 1, %v2349_v26  ;;  %v635_v48 = vadd.s32 %v633_v35, %v627_v6 }
  0xdb   : > { %v613_v19 = vadd.s32 %v611_v33, %v605_v17  ;;  %vm614_vm8 = vc.u32 %v612_v31, %v608_v55  ;;  %v629_v60 = vshrl.u32 %v625_v16, 16  ;;  %vm636_vm11 = vc.u32 %v634_v44, %v630_v9 }
  0xdc   : > { %v499_v8 = vsel %vm497_vm6, %v498_v59, %v496_v18  ;;  %v615_v42 = vsel %vm614_vm8, 1, %v2349_v26  ;;  %v585_v2 = vsel %vm581_vm2, %v565_v57, %v2823_v4  ;;  %v587_v15 = vsel %vm583_vm3, %v2825_v34, %v586_v14 }
  0xdd   : > { %v500_v20 = vclz %v499_v8  ;;  %v617_v41 = vadd.s32 %v615_v42, %v613_v19  ;;  %v637_v0 = vsel %vm636_vm11, 1, %v2349_v26  ;;  %v631_v7 = vshrl.u32 %v626_v30, 16  ;;  %v706_v8 = vld [vmem:[%s3053_s3 + $0x10] sm:$0xff]  ;;  %v705_v42 = vld [vmem:[%s3053_s3 + $0x8] sm:$0xff] }
  0xde   : > { %v2873_v56 = vadd.s32 %v634_v44, %v630_v9  ;;  %v639_v36 = vadd.s32 %v637_v0, %v635_v48  ;;  %v588_v16 = vsel %vm582_vm5, %v585_v2, %v587_v15  ;;  %v1135_v34 = vadd.f32 2.9802322e-08, %v2497_v38  ;;  %v1017_v38 = vld [vmem:[#allocation4 + $0x10] sm:$0xff]  ;;  %1067 = vmatpush.msra.mxu2 %v706_v8 }
  0xdf   : > { %v2069_v46 = vadd.s32 4294967294, %v500_v20  ;;  %v618_v52 = vadd.s32 %v617_v41, %v607_v32  ;;  %v642_v30 = vmul.u32 %v2830_v10, %v588_v16  ;;  %v1016_v10 = vld [vmem:[#allocation4 + $0x8] sm:$0xff]  ;;  %v518_v20 = vsub.s32 4, %v2854_v51  ;;  %1038 = vmatpush.msra.mxu1 %v1017_v38  ;;  %v1015_v41 = vld [vmem:[#allocation4] sm:$0xff] }
  0xe0   : > { %v640_v4 = vadd.s32 %v639_v36, %v629_v60  ;;  %2195 = vlog2.f32 %v1135_v34  ;;  %1068 = vmatpush.msra.mxu2 %v705_v42  ;;  %vm537_vm3 = vweird.f32 %v2698_v63  ;;  %vm1018_vm5 = vcmask 195584  }
  0xe1   : > { %vm2070_vm12 = vcmp.lt.s32.totalorder %v2069_v46, 0  ;;  %v2875_v53 = vadd.s32 %v618_v52, %v609_v47  ;;  %1039 = vmatpush.msra.mxu1 %v1016_v10  ;;  %v1134_v47 = vadd.f32 2.9802322e-08, %v2495_v37 }
  0xe2   : > { %v503_v43 = vsel %vm2070_vm12, 0, %v2069_v46  ;;  %v641_v55 = vadd.s32 %v640_v4, %v631_v7  ;;  %1069 = vmatpush.msra.mxu2 %v704_v5 }
  0xe3   : > { %v504_v11 = vsub.s32 32, %v503_v43  ;;  %v505_v23 = vshll.u32 %v496_v18, %v503_v43  ;;  %v508_v61 = vsub.s32 4294967266, %v503_v43  ;;  %vm644_vm13 = vc.u32 %v2875_v53, %v2873_v56  ;;  %1040 = vmatpush.msra.mxu1 %v1015_v41 }
  0xe4   : > { %v645_v18 = vadd.s32 1, %v641_v55  ;;  %2197 = vlog2.f32 %v1134_v47 }
  0xe5   : > { %v506_v17 = vshrl.u32 %v488_v50, %v504_v11  ;;  %v509_v22 = vadd.s32 127, %v508_v61  ;;  %v519_v50 = vsel %vm396_vm14, %v518_v20, %v2854_v51 }
  0xe6   : > { %v646_v32 = vsel %vm644_vm13, %v645_v18, %v641_v55  ;;  %v2196_v14 = vpop.eup %2195  ;;  %v521_v43 = vsel %vm2889_vm15, 0, %v519_v50  ;;  %v643_v55 = vadd.s32 %v2873_v56, %v2875_v53 }
  0xe7   : > { %v507_v26 = vor.u32 %v506_v17, %v505_v23  ;;  %v510_v29 = vshll.u32 %v509_v22, 23  ;;  %v647_v33 = vadd.s32 %v646_v32, %v642_v30  ;;  %v1139_v48 = vmul.f32 0.6931472, %v2196_v14 }
  0xe8   : > { %v538_v16 = vadd.s32 3, %v521_v43  ;;  %v1466_v14 = vand.u32 3, %v2670_v54 }
  0xe9   : > { %v511_v59 = vor.u32 4788187, %v510_v29  ;;  %v514_v31 = vcvt.s32.f32 %v507_v26  ;;  %v648_v1 = vadd.s32 536870912, %v647_v33  ;;  %v2914_v7 = vmul.f32 -2.0, %v1139_v48 }
  0xea   : > { %v2198_v34 = vpop.eup %2197  ;;  %v851_v26 = vand.u32 3, %v521_v43  ;;  %vm1467_vm12 = vcmp.lt.s32.totalorder %v1466_v14, 2  ;;  %vm1468_vm13 = vcmp.eq.s32.totalorder %v1466_v14, 0 }
  0xeb   : > { %v512_v24 = vand.u32 2147483647, %v511_v59  ;;  %v2894_v57 = vshrl.u32 %v648_v1, 30  ;;  %2199 = vrsqrt.f32 %v2914_v7  ;;  %v539_v59 = vand.u32 3, %v538_v16 }
  0xec   : > { %vm856_vm4 = vcmp.eq.s32.totalorder %v851_v26, 2  ;;  %vm852_vm6 = vcmp.lt.s32.totalorder %v851_v26, 2  ;;  %vm853_vm8 = vcmp.eq.s32.totalorder %v851_v26, 0  ;;  %v1164_v39 = vand.u32 2147483648, %v2914_v7 }
  0xed   : > { %v515_v6 = vmul.f32 %v514_v31, %v512_v24  ;;  %v650_v44 = vshll.u32 %v2894_v57, 30  ;;  %vm544_vm7 = vcmp.eq.s32.totalorder %v539_v59, 2  ;;  %vm541_vm9 = vcmp.eq.s32.totalorder %v539_v59, 0 }
  0xee   : > { %vm540_vm11 = vcmp.lt.s32.totalorder %v539_v59, 2 }
  0xef   : > { %v516_v9 = vxor.u32 2147483648, %v515_v6  ;;  %v651_v60 = vsub.s32 %v647_v33, %v650_v44  ;;  %v1137_v33 = vmul.f32 0.6931472, %v2198_v34 }
  0xf1   : > { %v517_v35 = vsel %vm396_vm14, %v516_v9, %v515_v6  ;;  %vm652_vm0 = vcmp.lt.s32.totalorder %v651_v60, 0  ;;  %v653_v2 = vsub.s32 0, %v651_v60  ;;  %v2200_v10 = vpop.eup %2199  ;;  %vm1471_vm14 = vcmp.eq.s32.totalorder %v1466_v14, 2 }
  0xf2   : > { %v520_v46 = vsel %vm2889_vm15, %v2698_v63, %v517_v35  ;;  %v1155_v44 = vmul.f32 %v2200_v10, %v2914_v7  ;;  %vm551_vm15 = vcmp.lt.s32.totalorder %v2714_v3, 0  ;;  %v1473_v43 = vsel %vm1471_vm14, %v1472_v27, %v2683_v62 }
  0xf3   : > { %v522_v52 = vmul.f32 %v520_v46, %v520_v46  ;;  %v654_v37 = vsel %vm652_vm0, %v653_v2, %v651_v60  ;;  %v1312_v63 = vand.u32 3, %v2704_v25  ;;  %vm2943_vm0 = vcmp.le.f32.partialorder %v549_v45, 0.7853982 }
  0xf4   : > { %v655_v23 = vclz %v654_v37 }
  0xf5   : > { %v523_v15 = vmul.f32 -0.001358992, %v522_v52  ;;  %v530_v0 = vmul.f32 -0.00019511016, %v522_v52 }
  0xf6   : > { %v2072_v4 = vadd.s32 4294967294, %v655_v23 }
  0xf7   : > { %v524_v36 = vadd.f32 0.041655596, %v523_v15  ;;  %v531_v11 = vadd.f32 0.008332121, %v530_v0  ;;  %v1156_v15 = vmul.f32 %v2200_v10, %v1155_v44 }
  0xf8   : > { %vm2073_vm2 = vcmp.lt.s32.totalorder %v2072_v4, 0 }
  0xf9   : > { %v525_v61 = vmul.f32 %v524_v36, %v522_v52  ;;  %v532_v51 = vmul.f32 %v531_v11, %v522_v52  ;;  %v658_v29 = vsel %vm2073_vm2, 0, %v2072_v4  ;;  %v1157_v36 = vmul.f32 0.5, %v1156_v15 }
  0xfa   : > { %v659_v31 = vsub.s32 32, %v658_v29  ;;  %v660_v32 = vshll.u32 %v651_v60, %v658_v29  ;;  %v663_v24 = vsub.s32 4294967266, %v658_v29  ;;  %v1470_v60 = vsel %vm1468_vm13, %v2673_v12, %v1469_v28 }
  0xfb   : > { %v526_v17 = vadd.f32 -0.4999988, %v525_v61  ;;  %v533_v22 = vadd.f32 -0.16666654, %v532_v51  ;;  %v673_v28 = vsub.s32 4, %v2894_v57  ;;  %v1474_v37 = vsel %vm1467_vm12, %v1470_v60, %v1473_v43 }
  0xfc   : > { %v661_v38 = vshrl.u32 %v643_v55, %v659_v31  ;;  %v664_v8 = vadd.s32 127, %v663_v24  ;;  %v2939_v11 = vmul.f32 -2.0, %v1137_v33  ;;  %v1475_v12 = vsel %vm1465_vm1, nan, %v1474_v37  ;;  %v2193_v37 = vld [vmem:[%s3055_s5] ss:$0 sm:$0xff] }
  0xfd   : > { %v527_v30 = vmul.f32 %v526_v17, %v522_v52  ;;  %v534_v18 = vmul.f32 %v533_v22, %v522_v52  ;;  %1480 = vrot.lane.b32.xlu1 %v1475_v12, %s2350_s10  ;;  %v1158_v62 = vsub.f32 1.5, %v1157_v36  ;;  %vm1313_vm2 = vcmp.lt.s32.totalorder %v1312_v63, 2 }
  0xfe   : > { %v662_v19 = vor.u32 %v661_v38, %v660_v32  ;;  %v665_v9 = vshll.u32 %v664_v8, 23  ;;  %v674_v40 = vsel %vm551_vm15, %v673_v28, %v2894_v57  ;;  %2201 = vrsqrt.f32 %v2939_v11 }
  0xff   : > { %v528_v6 = vadd.f32 1.0, %v527_v30  ;;  %v535_v1 = vadd.f32 1.0, %v534_v18  ;;  %v1159_v16 = vmul.f32 %v2200_v10, %v1158_v62  ;;  %vm1161_vm1 = vcmp.eq.f32.partialorder %v2914_v7, inf }
 0x100   : > { %v666_v41 = vor.u32 4788187, %v665_v9  ;;  %v669_v5 = vcvt.s32.f32 %v662_v19  ;;  %vm692_vm13 = vweird.f32 %v2714_v3  ;;  %vm1149_vm14 = vcmp.eq.f32.partialorder %v2939_v11, inf }
 0x101   : > { %v536_v56 = vmul.f32 %v535_v1, %v520_v46  ;;  %v545_v53 = vxor.u32 2147483648, %v528_v6 }
 0x102   : > { %v667_v46 = vand.u32 2147483647, %v666_v41 }
 0x103   : > { %v542_v20 = vxor.u32 2147483648, %v536_v56  ;;  %v858_v42 = vsel %vm856_vm4, %v545_v53, %v536_v56  ;;  %v546_v35 = vsel %vm544_vm7, %v545_v53, %v536_v56  ;;  %vm1317_vm4 = vcmp.eq.s32.totalorder %v1312_v63, 2 }
 0x104   : > { %v670_v0 = vmul.f32 %v669_v5, %v667_v46  ;;  %v1319_v45 = vsel %vm1317_vm4, %v1318_v13, %v2739_v49  ;;  %v2202_v30 = vpop.eup %2201 }
 0x105   : > { %v855_v47 = vsel %vm853_vm8, %v528_v6, %v542_v20  ;;  %v543_v48 = vsel %vm541_vm9, %v528_v6, %v542_v20  ;;  %v1143_v38 = vmul.f32 %v2202_v30, %v2939_v11 }
 0x106   : > { %v859_v50 = vsel %vm852_vm6, %v855_v47, %v858_v42  ;;  %v547_v52 = vsel %vm540_vm11, %v543_v48, %v546_v35  ;;  %v671_v61 = vxor.u32 2147483648, %v670_v0 }
 0x107   : > { %v860_v54 = vsel %vm537_vm3, nan, %v859_v50  ;;  %v548_v2 = vsel %vm537_vm3, nan, %v547_v52  ;;  %vm1314_vm3 = vcmp.eq.s32.totalorder %v1312_v63, 0  ;;  %v1144_v20 = vmul.f32 %v2202_v30, %v1143_v38  ;;  %v1874_v38 = vld [vmem:[#allocation7 + $0x8] sm:$0xff] }
 0x108   : > { %2080 = vmatmul.msk.f32.vlgmr.msra.gmra.mxu1 %vm1018_vm5, %v860_v54  ;;  %2082 = vmatmul.msk.f32.vlgmr.msra.gmra.mxu2 %vm1018_vm5, %v548_v2  ;;  %v672_v27 = vsel %vm551_vm15, %v671_v61, %v670_v0  ;;  %v1316_v25 = vsel %vm1314_vm3, %v2729_v21, %v1315_v58  ;;  %v676_v21 = vsel %vm2943_vm0, 0, %v674_v40  ;;  %v1160_v58 = vmul.f32 %v1159_v16, %v2914_v7 }
 0x109   : > { %v675_v51 = vsel %vm2943_vm0, %v2714_v3, %v672_v27  ;;  %v1320_v4 = vsel %vm1313_vm2, %v1316_v25, %v1319_v45  ;;  %v693_v55 = vadd.s32 3, %v676_v21  ;;  %v1005_v32 = vand.u32 3, %v676_v21 }
 0x10a   : > { %v677_v17 = vmul.f32 %v675_v51, %v675_v51  ;;  %v1321_v22 = vsel %vm1311_vm10, nan, %v1320_v4  ;;  %v1162_v18 = vsel %vm1161_vm1, %v2914_v7, %v1160_v58  ;;  %vm1163_vm10 = vcmp.eq.f32.partialorder %v2914_v7, 0.0 }
 0x10b   : > { %1478 = vrot.lane.b32.xlu2 %v1321_v22, %s2350_s10  ;;  %v694_v24 = vand.u32 3, %v693_v55  ;;  %v1165_v1 = vsel %vm1163_vm10, %v1164_v39, %v1162_v18  ;;  %vm1010_vm6 = vcmp.eq.s32.totalorder %v1005_v32, 2  ;;  %vm1006_vm8 = vcmp.lt.s32.totalorder %v1005_v32, 2  ;;  %v1879_v39 = vld [vmem:[#allocation7 + $0x30] sm:$0xff]  ;;  %s334_s10 = sand.u32 1, %s2329_s12  }
 0x10c   : > { %v678_v49 = vmul.f32 -0.001358992, %v677_v17  ;;  %v685_v13 = vmul.f32 -0.00019511016, %v677_v17  ;;  %vm1007_vm9 = vcmp.eq.s32.totalorder %v1005_v32, 0  ;;  %v1145_v35 = vmul.f32 0.5, %v1144_v20 }
 0x10d   : > { %vm699_vm7 = vcmp.eq.s32.totalorder %v694_v24, 2  ;;  %vm696_vm11 = vcmp.eq.s32.totalorder %v694_v24, 0  ;;  %vm695_vm12 = vcmp.lt.s32.totalorder %v694_v24, 2  ;;  %v1152_v54 = vand.u32 2147483648, %v2939_v11  ;;  %v1877_v32 = vld [vmem:[#allocation7 + $0x20] sm:$0xff]  ;;  %s2060_s15 = sshll.u32 %s334_s10, 3 }
 0x10e   : > { %v679_v57 = vadd.f32 0.041655596, %v678_v49  ;;  %v686_v34 = vadd.f32 0.008332121, %v685_v13  ;;  %v1146_v50 = vsub.f32 1.5, %v1145_v35  ;;  %vm1151_vm15 = vcmp.eq.f32.partialorder %v2939_v11, 0.0 }
 0x10f   : > { %vm1861_vm0 = vcmask 523264   ;;  %vm1870_vm2 = vcmask 7168   ;;  %s336_s1 = scalar_lea.vmem [#allocation9], %s2060_s15  ;;  %s1919_s23 = scalar_lea.sflag [#allocation6], %s334_s10 }
 0x110   : > { %v680_v26 = vmul.f32 %v679_v57, %v677_v17  ;;  %v687_v29 = vmul.f32 %v686_v34, %v677_v17  ;;  %v1147_v52 = vmul.f32 %v2202_v30, %v1146_v50  ;;  %s3018_s2 = sshll.u32 %s336_s1, 4  ;;  %s1937_s2 = int_to_ptr.vmem [resolvable:$true] %s3018_s2 }
 0x112   : > { %v681_v59 = vadd.f32 -0.4999988, %v680_v26  ;;  %v688_v31 = vadd.f32 -0.16666654, %v687_v29  ;;  %v1148_v60 = vmul.f32 %v1147_v52, %v2939_v11  ;;  %v1880_v29 = vld [vmem:[#allocation7 + $0x38] sm:$0xff] }
 0x113   : > { %2112 = vmatpush.msra.mxu3 %v1880_v29  ;;  %1899 = vmatpush.msrb.mxu0 %v1880_v29 }
 0x114   : > { %v682_v33 = vmul.f32 %v681_v59, %v677_v17  ;;  %v689_v6 = vmul.f32 %v688_v31, %v677_v17  ;;  %v1150_v3 = vsel %vm1149_vm14, %v2939_v11, %v1148_v60  ;;  %v1878_v59 = vld [vmem:[#allocation7 + $0x28] sm:$0xff] }
 0x115   : > { %v1153_v2 = vsel %vm1151_vm15, %v1152_v54, %v1150_v3  ;;  %2113 = vmatpush.msra.mxu3 %v1879_v39  ;;  %1900 = vmatpush.msrb.mxu0 %v1879_v39  ;;  %v2194_v54 = vld [vmem:[%s3057_s7] ss:$0 sm:$0xff] }
 0x116   : > { %v683_v8 = vadd.f32 1.0, %v682_v33  ;;  %v690_v10 = vadd.f32 1.0, %v689_v6  ;;  %v1876_v6 = vld [vmem:[#allocation7 + $0x18] sm:$0xff] }
 0x117   : > { %v1801_v56 = vpop.permute.xlu0 %1800  ;;  %2114 = vmatpush.msra.mxu3 %v1878_v59  ;;  %1901 = vmatpush.msrb.mxu0 %v1878_v59 }
 0x118   : > { %v1805_v53 = vmul.f32 %v1801_v56, %v1165_v1  ;;  %v691_v19 = vmul.f32 %v690_v10, %v675_v51  ;;  %v700_v9 = vxor.u32 2147483648, %v683_v8  ;;  %v1873_v10 = vld [vmem:[#allocation7] sm:$0xff] }
 0x119   : > { %2115 = vmatpush.msra.mxu3 %v1877_v32  ;;  %1902 = vmatpush.msrb.mxu0 %v1877_v32 }
 0x11a   : > { %1810 = vrot.lane.b32.xlu1 %v1805_v53, %s2351_s27  ;;  %v697_v7 = vxor.u32 2147483648, %v691_v19  ;;  %v1012_v42 = vsel %vm1010_vm6, %v700_v9, %v691_v19  ;;  %v701_v14 = vsel %vm699_vm7, %v700_v9, %v691_v19 }
 0x11b   : > { %2116 = vmatpush.msra.mxu3 %v1876_v6  ;;  %1903 = vmatpush.msrb.mxu0 %v1876_v6 }
 0x11c   : > { %v1009_v41 = vsel %vm1007_vm9, %v683_v8, %v697_v7  ;;  %v698_v5 = vsel %vm696_vm11, %v683_v8, %v697_v7 }
 0x11d   : > { %v1013_v44 = vsel %vm1006_vm8, %v1009_v41, %v1012_v42  ;;  %v702_v47 = vsel %vm695_vm12, %v698_v5, %v701_v14 }
 0x11e   : > { %v1014_v48 = vsel %vm692_vm13, nan, %v1013_v44  ;;  %v703_v46 = vsel %vm692_vm13, nan, %v702_v47 }
 0x11f   : > { %2081 = vmatmul.msk.f32.gmra.mxu1 %vm1018_vm5, %v1014_v48  ;;  %2083 = vmatmul.msk.f32.gmra.mxu2 %vm1018_vm5, %v703_v46  ;;  %vm1814_vm5 = vcmask 261120  }
 0x134   : > { %v1799_v15 = vpop.permute.xlu0 %1798 }
 0x135   : > { %v1804_v0 = vmul.f32 %v1799_v15, %v1153_v2 }
 0x137   : > { %1808 = vrot.lane.b32.xlu2 %v1804_v0, %s2351_s27  ;;  %s1935_s27 = scalar_lea.hbm %s3058_s8, %s2106_s17 }
 0x138   : > { %s1938_s0 = sshll.u32 %s1935_s27, 4  ;;  %s1939_s0 = int_to_ptr.hbm [resolvable:$true] %s1938_s0 }
 0x165   : > { %v1479_v28 = vpop.permute.xlu2 %1478 }
 0x166   : > { %v1484_v25 = vmul.f32 %v1479_v28, %v1153_v2 }
 0x16f   : > { %v1481_v43 = vpop.permute.xlu1 %1480 }
 0x170   : > { %v1485_v61 = vmul.f32 %v1481_v43, %v1165_v1  ;;  %v1875_v1 = vld [vmem:[#allocation7 + $0x10] sm:$0xff] }
 0x171   : > { %2117 = vmatpush.msra.mxu3 %v1875_v1  ;;  %1904 = vmatpush.msrb.mxu0 %v1875_v1 }
 0x173   : > { %2118 = vmatpush.msra.mxu3 %v1874_v38  ;;  %1905 = vmatpush.msrb.mxu0 %v1874_v38 }
 0x175   : > { %2119 = vmatpush.msra.mxu3 %v1873_v10  ;;  %1906 = vmatpush.msrb.mxu0 %v1873_v10 }
 0x185   : > { %v1042_v36 = vpop.f32.mrf.mxu1 }
 0x18b   : > { %v1071_v63 = vpop.f32.mrf.mxu2 }
 0x18c   : > { %v1072_v23 = vadd.f32 %v1071_v63, %v1042_v36  ;;  %v1811_v62 = vpop.permute.xlu1 %1810 }
 0x18d   : > { %v1816_v27 = vsel %vm1814_vm5, %v1485_v61, %v1811_v62 }
 0x18e   : > { %v2987_v12 = vadd.f32 %v2193_v37, %v1072_v23  ;;  %1821 = vrot.lane.b32.xlu0 %v1816_v27, %s3060_s30 }
 0x190   : > { %v1083_v11 = vmax.f32 %v2987_v12, -30.0  ;;  %v1837_v44 = vmul.f32 %v2987_v12, %v2987_v12 }
 0x191   : > { %v1809_v45 = vpop.permute.xlu2 %1808 }
 0x192   : > { %v1085_v40 = vmin.f32 %v1083_v11, 20.0  ;;  %v1815_v51 = vsel %vm1814_vm5, %v1484_v25, %v1809_v45 }
 0x193   : > { %1819 = vrot.lane.b32.xlu1 %v1815_v51, %s3060_s30 }
 0x194   : > { %v1087_v16 = vmul.f32 0.5, %v1085_v40 }
 0x196   : > { %v1089_v4 = vmul.f32 1.442695, %v1087_v16 }
 0x198   : > { %2203 = vpow2.f32 %v1089_v4 }
 0x19c   : > { %v1045_v21 = vpop.f32.mrf.mxu1 }
 0x19e   : > { %v2204_v17 = vpop.eup %2203 }
 0x19f   : > { %v1093_v22 = vmul.f32 %v2204_v17, %v2204_v17 }
 0x1a1   : > { %1841 = vrot.lane.b32.xlu1 %v1093_v22, %s3060_s30 }
 0x1a2   : > { %v1074_v49 = vpop.f32.mrf.mxu2 }
 0x1a3   : > { %v1075_v13 = vadd.f32 %v1074_v49, %v1045_v21 }
 0x1a5   : > { %v1082_v58 = vadd.f32 %v2193_v37, %v1075_v13 }
 0x1a7   : > { %v1084_v57 = vmax.f32 %v1082_v58, -30.0  ;;  %v1838_v9 = vmul.f32 %v1082_v58, %v1082_v58 }
 0x1a9   : > { %v1086_v34 = vmin.f32 %v1084_v57, 20.0 }
 0x1ab   : > { %1855 = vrot.lane.b32.xlu1 %v1086_v34, %s3060_s30  ;;  %v1088_v55 = vmul.f32 0.5, %v1086_v34 }
 0x1ad   : > { %v1091_v26 = vmul.f32 1.442695, %v1088_v55 }
 0x1af   : > { %2205 = vpow2.f32 %v1091_v26 }
 0x1b5   : > { %v2206_v30 = vpop.eup %2205 }
 0x1b6   : > { %v1094_v8 = vmul.f32 %v2206_v30, %v2206_v30 }
 0x200   : > { %v1822_v18 = vpop.permute.xlu0 %1821 }
 0x201   : > { %v1826_v31 = vmul.f32 %v2206_v30, %v1822_v18 }
 0x203   : > { %1831 = vrot.lane.b32.xlu2 %v1826_v31, %s3060_s30 }
 0x205   : > { %v1820_v24 = vpop.permute.xlu1 %1819 }
 0x206   : > { %v1825_v33 = vmul.f32 %v2204_v17, %v1820_v24 }
 0x208   : > { %1829 = vrot.lane.b32.xlu0 %v1825_v33, %s3060_s30 }
 0x20b   : > { %1843 = vrot.lane.b32.xlu2 %v1094_v8, %s3060_s30 }
 0x210   : > { %1853 = vrot.lane.b32.xlu0 %v1085_v40, %s3060_s30  ;;  %s355_s30 = scalar_lea.vmem %s3059_s9, %s2062_s25  ;;  %s2281_s25 = sshra.s32 %s1939_s0, 4  ;;  %s2282_s25 = int_to_ptr.hbm [resolvable:$true] %s2281_s25 }
 0x211   : > { %s2283_s15 = scalar_lea.hbm %s2282_s25, 8  ;;  %p2288_p3 = scmp.lt.s32.totalorder %s2282_s25, %s3058_s8 }
 0x212   : > { %p2284_p0 = scmp.ne.s32.totalorder %s2282_s25, %s2283_s15  ;;  %p2289_p4 = scmp.lt.s32.totalorder %s2287_s24, %s2283_s15 }
 0x213   : > { %v1842_v19 = vpop.permute.xlu1 %1841 }
 0x214   : > { %v1847_v48 = vadd.f32 %v1842_v19, %v1837_v44  ;;  %p2285_p1 = pnand %p2284_p0, %p2445_p5  ;;  %p2290_p7 = por %p2289_p4, %p2288_p3 }
 0x216   : > { %v2097_v46 = vadd.f32 -1.0, %v1847_v48  ;;  %p2286_p2 = pneg %p2285_p1 }
 0x218   : > { %p2291_p8 = pnand %p2290_p7, %p2286_p2 }
 0x21d   : > { %v1856_v14 = vpop.permute.xlu1 %1855 }
 0x25d   : > { %v1832_v56 = vpop.permute.xlu2 %1831 }
 0x25e   : > { %v1836_v53 = vadd.f32 %v1832_v56, %v1082_v58 }
 0x260   : > { %2100 = vmatmul.msk.f32.vlgmr.msra.gmra.mxu3 %vm1861_vm0, %v1836_v53 }
 0x265   : > { %v1844_v20 = vpop.permute.xlu2 %1843 }
 0x266   : > { %v1848_v7 = vadd.f32 %v1844_v20, %v1838_v9 }
 0x268   : > { %v2098_v42 = vadd.f32 -1.0, %v1848_v7 }
 0x26a   : > { %v1860_v41 = vsub.f32 %v2098_v42, %v1856_v14 }
 0x26c   : > { %v1865_v5 = vsel %vm1861_vm0, %v1860_v41, 0.0 }
 0x26d   : > { %1866 = vadd.xlane.f32.xlu0 %v1865_v5 }
 0x27a   : > { %v1830_v35 = vpop.permute.xlu0 %1829 }
 0x27b   : > { %v1835_v47 = vadd.f32 %v1830_v35, %v2987_v12 }
 0x27d   : > { %2099 = vmatmul.msk.f32.vlgmr.msrb.gmra.mxu0 %vm1861_vm0, %v1835_v47 }
 0x282   : > { %v1854_v50 = vpop.permute.xlu0 %1853 }
 0x283   : > { %v1859_v52 = vsub.f32 %v2097_v46, %v1854_v50 }
 0x285   : > { %v1862_v60 = vsel %vm1861_vm0, %v1859_v52, 0.0 }
 0x286   : > { %1863 = vadd.xlane.f32.xlu2 %v1862_v60 }
 0x2e0   : > { %v1867_v3 = vpop.xlane.xlu0 %1866 }
 0x2e1   : > { %v1869_v28 = vmul.f32 0.5, %v1867_v3 }
 0x2e3   : > { %v1911_v2 = vpop.f32.mrf.mxu3  ;;  %1872 = vst.msk [vmem:[%s355_s30 + $0x8] sm:$0xff] %vm1870_vm2, %v1869_v28 }
 0x2e4   : > { %v1912_v37 = vadd.f32 %v2194_v54, %v1911_v2 }
 0x2f9   : > { %v1864_v15 = vpop.xlane.xlu2 %1863 }
 0x2fa   : > { %v1868_v0 = vmul.f32 0.5, %v1864_v15  ;;  %v1908_v43 = vpop.f32.mrf.mxu0 }
 0x2fb   : > { %v1909_v36 = vadd.f32 %v2194_v54, %v1908_v43 }
 0x2fc   : > { %1871 = vst.msk [vmem:[%s355_s30] sm:$0xff] %vm1870_vm2, %v1868_v0 }
 0x2fd   : > { %v2110_v63 = vpack.c.bf16 %v1912_v37, %v1909_v36 }
 0x2ff   : > { %2111 = vst [vmem:[%s336_s1] sm:$0xff] %v2110_v63  }
 0x300   : > { %2294 = shalt.err (!%p2291_p8)
}
 0x301   : > { %s2353_s1 = smov 4   ;;  %s3074_s30 = smov 64  }
 0x302   : > { %2128 = dma.vmem_to_hbm [thread:$0]  (%p2445_p5), %s1937_s2, 128, %s1939_s0, %s1919_s23, %s3074_s30, %s3074_s30, %s2353_s1  }
 0x303 PF: > { %p2145_p9 = scmp.ge.s32.totalorder %s2337_s14, 2  ;;  %s1957_s10 = sand.u32 1, %s2325_s11  }
 0x304   : > { %s1958_s27 = scalar_lea.sflag [#allocation6], %s1957_s10 }
 0x305   : > { %p2138_p10 = pnand %p2145_p9, %p2449_p6 }
 0x307   : > { %p2139_p11 = pneg %p2138_p10 }
 0x309   : > { %2320 = dma.done.wait (%p2139_p11), %s1958_s27, 128  }
 0x30a   : > { %2322 = vsyncadd (%p2139_p11), %s1958_s27, 4294967168  ;;  %p23_p12 = scmp.ge.s32.totalorder %s2432_s16, 4   ;;  %s3075_s11 = smov %s2329_s12 }
 0x30b   : > { %s3076_s12 = smov %s2333_s13  ;;  %s3077_s13 = smov %s2443_s19 }
 0x30c   : > { %s3078_s14 = smov %s2432_s16  ;;  %25 = sbr.rel (!%p23_p12) target bundleno = 9 (0x9), region = 104 }
 0x311   :  { %1972 = vsyncpa [#allocation5], 1 }
 0x312   :  { %1974 = vsyncpa [#allocation5 + $0x1], 1 }
 0x313   :  { %1975 = vsyncpa [#allocation8], 1 }
 0x314   :  { %1976 = vsyncpa [#allocation6], 1 }
 0x315   :  { %1978 = vsyncpa [#allocation6 + $0x1], 1 }

</bundles_post_ra>
